<compile_context>
chip_gen: v6e
topology: v6e:2x2x1
jax: 0.10.0
libtpu: 0.0.40
codegen_flags: <defaults>
</compile_context>

<pallas_src>
import math
import jax
import jax.numpy as jnp
from jax.experimental import pallas as pl
from jax.experimental.pallas import tpu as pltpu

# --- ATPConfig-style hyperparameters (small, deterministic, in-script) ------
D_MODEL = 32
N_HEADS = 4
D_FF = 64
N_LAYERS = 2
HEAD_DIM = D_MODEL // N_HEADS
LN_EPS = 1e-5

USE_TEXT_QUERY = False
USE_TEXT_CANDS = False
N_CANDS = 5

SEQ_T = 8
BATCH_B = 2


def _layernorm(x, gamma, beta):
    mu = jnp.mean(x, axis=-1, keepdims=True)
    var = jnp.mean((x - mu) ** 2, axis=-1, keepdims=True)
    return (x - mu) * jax.lax.rsqrt(var + LN_EPS) * gamma + beta


def dtp_encoder_kernel(x_ref, mod_ref,
                       wqkv_ref, bqkv_ref, wo_ref, bo_ref,
                       w1_ref, b1_ref, w2_ref, b2_ref,
                       g1_ref, be1_ref, g2_ref, be2_ref,
                       o_ref):
    TB = x_ref.shape[0]                                    # T * B rows

    # scale + modality embedding (already expanded to (T*B, D) in the wrapper)
    x = x_ref[...].astype(jnp.float32) * jnp.float32(math.sqrt(D_MODEL))
    x = x + mod_ref[...]
    # TODO(synk): dropout(p=enc_dropout) is identity at inference; training-mode
    # dropout is not implemented.

    # Rows are interleaved t-major over the native (T, B, D) layout, so two
    # rows belong to the same batch element iff (row % B) matches.  Built once,
    # reused by every layer/head (block-diagonal-style attention mask).
    row_b = jax.lax.broadcasted_iota(jnp.int32, (TB, TB), 0) % BATCH_B
    col_b = jax.lax.broadcasted_iota(jnp.int32, (TB, TB), 1) % BATCH_B
    same_batch = row_b == col_b
    neg_inf = jnp.float32(-1e30)

    for l in range(N_LAYERS):
        # ---- fused QKV projection: one (TB, D) @ (D, 3D) matmul ------------
        qkv = jnp.dot(x.astype(jnp.bfloat16), wqkv_ref[l],
                      preferred_element_type=jnp.float32) + bqkv_ref[l]

        # ---- multi-head attention (head_scale pre-folded into q weights) ---
        heads = []
        for h in range(N_HEADS):
            qh = qkv[:, h * HEAD_DIM:(h + 1) * HEAD_DIM]
            kh = qkv[:, D_MODEL + h * HEAD_DIM:D_MODEL + (h + 1) * HEAD_DIM]
            vh = qkv[:, 2 * D_MODEL + h * HEAD_DIM:2 * D_MODEL + (h + 1) * HEAD_DIM]
            s = jnp.dot(qh.astype(jnp.bfloat16), kh.astype(jnp.bfloat16).T,
                        preferred_element_type=jnp.float32)          # (TB, TB)
            s = jnp.where(same_batch, s, neg_inf)
            s = s - jnp.max(s, axis=-1, keepdims=True)
            p = jnp.exp(s)
            p = p * pl.reciprocal(jnp.sum(p, axis=-1, keepdims=True),
                                  approx=True)
            heads.append(jnp.dot(p.astype(jnp.bfloat16),
                                 vh.astype(jnp.bfloat16),
                                 preferred_element_type=jnp.float32))  # (TB, Dh)

        attn = jnp.concatenate(heads, axis=-1)                         # (TB, D)
        attn = jnp.dot(attn.astype(jnp.bfloat16), wo_ref[l],
                       preferred_element_type=jnp.float32) + bo_ref[l]

        x = _layernorm(x + attn, g1_ref[l], be1_ref[l])

        # ---- feed-forward ---------------------------------------------------
        ff = jnp.dot(x.astype(jnp.bfloat16), w1_ref[l],
                     preferred_element_type=jnp.float32) + b1_ref[l]
        ff = jnp.maximum(ff, 0.0)                                      # relu
        ff = jnp.dot(ff.astype(jnp.bfloat16), w2_ref[l],
                     preferred_element_type=jnp.float32) + b2_ref[l]
        x = _layernorm(x + ff, g2_ref[l], be2_ref[l])

    o_ref[...] = x.astype(o_ref.dtype)


def make_modality_embedding(emb_table, seq_len):
    """Glue replicating ModalityEmbeddings.forward's class-id construction."""
    n_text = (1 if USE_TEXT_QUERY else 0) + (N_CANDS if USE_TEXT_CANDS else 0)
    n_frames = seq_len - n_text
    ids = []
    if USE_TEXT_QUERY:
        ids.append(0)                       # TEXT_QUESTION
    if USE_TEXT_CANDS:
        ids.extend([1] * N_CANDS)           # TEXT_EMBEDDING
    ids.extend([3] * n_frames)              # VISUAL_EMBEDDING
    ids = jnp.asarray(ids, dtype=jnp.int32)
    return emb_table[ids]                   # (T, D)


def init_params(key):
    ks = jax.random.split(key, 16)
    L, D, F = N_LAYERS, D_MODEL, D_FF
    s = 0.05
    p = {
        "emb_table": jax.random.normal(ks[0], (5, D), jnp.float32),
        "wq": jax.random.normal(ks[1], (L, D, D), jnp.float32) * s,
        "wk": jax.random.normal(ks[2], (L, D, D), jnp.float32) * s,
        "wv": jax.random.normal(ks[3], (L, D, D), jnp.float32) * s,
        "wo": jax.random.normal(ks[4], (L, D, D), jnp.float32) * s,
        "bq": jax.random.normal(ks[5], (L, 1, D), jnp.float32) * s,
        "bk": jax.random.normal(ks[6], (L, 1, D), jnp.float32) * s,
        "bv": jax.random.normal(ks[7], (L, 1, D), jnp.float32) * s,
        "bo": jax.random.normal(ks[8], (L, 1, D), jnp.float32) * s,
        "w1": jax.random.normal(ks[9], (L, D, F), jnp.float32) * s,
        "b1": jax.random.normal(ks[10], (L, 1, F), jnp.float32) * s,
        "w2": jax.random.normal(ks[11], (L, F, D), jnp.float32) * s,
        "b2": jax.random.normal(ks[12], (L, 1, D), jnp.float32) * s,
        "g1": jnp.ones((L, 1, D), jnp.float32),
        "be1": jnp.zeros((L, 1, D), jnp.float32),
        "g2": jnp.ones((L, 1, D), jnp.float32),
        "be2": jnp.zeros((L, 1, D), jnp.float32),
    }
    return p


def pack_params(p):
    """Fuse Q/K/V, fold head_scale into q, and cast matmul weights to bf16."""
    head_scale = 1.0 / math.sqrt(HEAD_DIM)
    wqkv = jnp.concatenate([p["wq"] * head_scale, p["wk"], p["wv"]], axis=-1)
    bqkv = jnp.concatenate([p["bq"] * head_scale, p["bk"], p["bv"]], axis=-1)
    return {
        "wqkv": wqkv.astype(jnp.bfloat16),      # (L, D, 3D)
        "bqkv": bqkv.astype(jnp.float32),       # (L, 1, 3D)
        "wo": p["wo"].astype(jnp.bfloat16),
        "bo": p["bo"].astype(jnp.float32),
        "w1": p["w1"].astype(jnp.bfloat16),
        "b1": p["b1"].astype(jnp.float32),
        "w2": p["w2"].astype(jnp.bfloat16),
        "b2": p["b2"].astype(jnp.float32),
        "g1": p["g1"], "be1": p["be1"], "g2": p["g2"], "be2": p["be2"],
    }


def dtp_encoder(x_tbd, packed, emb_table):
    """x_tbd: (T, B, D) float32 — same convention as the PyTorch module."""
    T, B, D = x_tbd.shape
    assert D == D_MODEL, "输入维度不匹配"
    assert B == BATCH_B

    # Native layout kept: only free contiguous reshapes (no transposes).
    x_flat = x_tbd.reshape(T * B, D)                              # (T*B, D)
    mod = make_modality_embedding(emb_table, T)                   # (T, D)
    mod_flat = jnp.repeat(mod, B, axis=0).astype(jnp.float32)     # row i -> mod[i // B]

    weight_names = ["wqkv", "bqkv", "wo", "bo", "w1", "b1", "w2", "b2",
                    "g1", "be1", "g2", "be2"]
    weights = [packed[n] for n in weight_names]

    def full_spec(arr):
        nd = arr.ndim
        return pl.BlockSpec(arr.shape, lambda i, _n=nd: (0,) * _n)

    in_specs = [full_spec(x_flat), full_spec(mod_flat)] + [full_spec(w) for w in weights]

    out_flat = pl.pallas_call(
        dtp_encoder_kernel,
        out_shape=jax.ShapeDtypeStruct((T * B, D), jnp.float32),
        grid_spec=pltpu.PrefetchScalarGridSpec(
            num_scalar_prefetch=0,
            grid=(1,),                                  # single invocation
            in_specs=in_specs,
            out_specs=pl.BlockSpec((T * B, D), lambda i: (0, 0)),
        ),
        compiler_params=pltpu.CompilerParams(
            dimension_semantics=("arbitrary",)),
    )(x_flat, mod_flat, *weights)

    return out_flat.reshape(T, B, D)


def dtp_encoder_ref(x_tbd, params):
    """Pure-JAX f32 reference (unfused, PyTorch-style math) for validation."""
    T, B, D = x_tbd.shape
    mod = make_modality_embedding(params["emb_table"], T)
    x = x_tbd * math.sqrt(D) + mod[:, None, :]
    scale = 1.0 / math.sqrt(HEAD_DIM)

    def ln(v, g, b):
        mu = v.mean(-1, keepdims=True)
        var = ((v - mu) ** 2).mean(-1, keepdims=True)
        return (v - mu) / jnp.sqrt(var + LN_EPS) * g + b

    for l in range(N_LAYERS):
        q = x @ params["wq"][l] + params["bq"][l]
        k = x @ params["wk"][l] + params["bk"][l]
        v = x @ params["wv"][l] + params["bv"][l]
        qh = q.reshape(T, B, N_HEADS, HEAD_DIM)
        kh = k.reshape(T, B, N_HEADS, HEAD_DIM)
        vh = v.reshape(T, B, N_HEADS, HEAD_DIM)
        s = jnp.einsum('tbhd,sbhd->bhts', qh, kh) * scale
        p = jax.nn.softmax(s, axis=-1)
        o = jnp.einsum('bhts,sbhd->tbhd', p, vh).reshape(T, B, D)
        attn = o @ params["wo"][l] + params["bo"][l]
        x = ln(x + attn, params["g1"][l], params["be1"][l])
        ff = jnp.maximum(x @ params["w1"][l] + params["b1"][l], 0.0)
        ff = ff @ params["w2"][l] + params["b2"][l]
        x = ln(x + ff, params["g2"][l], params["be2"][l])
    return x


if __name__ == "__main__":
    key = jax.random.PRNGKey(0)
    k_x, k_p = jax.random.split(key)
    x = jax.random.normal(k_x, (SEQ_T, BATCH_B, D_MODEL), jnp.float32)
    params = init_params(k_p)
    packed = pack_params(params)

    out = dtp_encoder(x, packed, params["emb_table"])
    jax.block_until_ready(out)
    assert out.shape == (SEQ_T, BATCH_B, D_MODEL)
    assert bool(jnp.all(jnp.isfinite(out)))

    ref = dtp_encoder_ref(x, params)
    max_err = float(jnp.max(jnp.abs(out - ref)))
    assert max_err < 0.1, f"mismatch vs f32 reference: {max_err}"
    print("KERNEL_OK")
</pallas_src>

<mosaic_0001>
module attributes {stable_mosaic.version = 11 : i64} {
  func.func @dtp_encoder_kernel(%arg0: i32, %arg1: memref<16x32xf32, #tpu.memory_space<vmem>>, %arg2: memref<16x32xf32, #tpu.memory_space<vmem>>, %arg3: memref<2x32x96xbf16, #tpu.memory_space<vmem>>, %arg4: memref<2x1x96xf32, #tpu.memory_space<vmem>>, %arg5: memref<2x32x32xbf16, #tpu.memory_space<vmem>>, %arg6: memref<2x1x32xf32, #tpu.memory_space<vmem>>, %arg7: memref<2x32x64xbf16, #tpu.memory_space<vmem>>, %arg8: memref<2x1x64xf32, #tpu.memory_space<vmem>>, %arg9: memref<2x64x32xbf16, #tpu.memory_space<vmem>>, %arg10: memref<2x1x32xf32, #tpu.memory_space<vmem>>, %arg11: memref<2x1x32xf32, #tpu.memory_space<vmem>>, %arg12: memref<2x1x32xf32, #tpu.memory_space<vmem>>, %arg13: memref<2x1x32xf32, #tpu.memory_space<vmem>>, %arg14: memref<2x1x32xf32, #tpu.memory_space<vmem>>, %arg15: memref<16x32xf32, #tpu.memory_space<vmem>>) attributes {dimension_semantics = [#tpu.dimension_semantics<arbitrary>], iteration_bounds = array<i64: 1>, scalar_prefetch = 0 : i64, scratch_operands = 0 : i64, tpu.core_type = #tpu.core_type<tc>, window_params = [{pipeline_mode = #tpu.pipeline_mode<synchronous>, transform_indices = @transform_0, window_bounds = array<i64: 16, 32>}, {pipeline_mode = #tpu.pipeline_mode<synchronous>, transform_indices = @transform_1, window_bounds = array<i64: 16, 32>}, {pipeline_mode = #tpu.pipeline_mode<synchronous>, transform_indices = @transform_2, window_bounds = array<i64: 2, 32, 96>}, {pipeline_mode = #tpu.pipeline_mode<synchronous>, transform_indices = @transform_3, window_bounds = array<i64: 2, 1, 96>}, {pipeline_mode = #tpu.pipeline_mode<synchronous>, transform_indices = @transform_4, window_bounds = array<i64: 2, 32, 32>}, {pipeline_mode = #tpu.pipeline_mode<synchronous>, transform_indices = @transform_5, window_bounds = array<i64: 2, 1, 32>}, {pipeline_mode = #tpu.pipeline_mode<synchronous>, transform_indices = @transform_6, window_bounds = array<i64: 2, 32, 64>}, {pipeline_mode = #tpu.pipeline_mode<synchronous>, transform_indices = @transform_7, window_bounds = array<i64: 2, 1, 64>}, {pipeline_mode = #tpu.pipeline_mode<synchronous>, transform_indices = @transform_8, window_bounds = array<i64: 2, 64, 32>}, {pipeline_mode = #tpu.pipeline_mode<synchronous>, transform_indices = @transform_9, window_bounds = array<i64: 2, 1, 32>}, {pipeline_mode = #tpu.pipeline_mode<synchronous>, transform_indices = @transform_10, window_bounds = array<i64: 2, 1, 32>}, {pipeline_mode = #tpu.pipeline_mode<synchronous>, transform_indices = @transform_11, window_bounds = array<i64: 2, 1, 32>}, {pipeline_mode = #tpu.pipeline_mode<synchronous>, transform_indices = @transform_12, window_bounds = array<i64: 2, 1, 32>}, {pipeline_mode = #tpu.pipeline_mode<synchronous>, transform_indices = @transform_13, window_bounds = array<i64: 2, 1, 32>}, {pipeline_mode = #tpu.pipeline_mode<synchronous>, transform_indices = @transform_14, window_bounds = array<i64: 16, 32>}]} {
    %c0 = arith.constant 0 : index
    %c0_0 = arith.constant 0 : index
    %0 = vector.load %arg1[%c0, %c0_0] : memref<16x32xf32, #tpu.memory_space<vmem>>, vector<16x32xf32>
    %cst = arith.constant 5.65685415 : f32
    %1 = vector.broadcast %cst : f32 to vector<16x32xf32>
    %2 = arith.mulf %0, %1 : vector<16x32xf32>
    %c0_1 = arith.constant 0 : index
    %c0_2 = arith.constant 0 : index
    %3 = vector.load %arg2[%c0_1, %c0_2] : memref<16x32xf32, #tpu.memory_space<vmem>>, vector<16x32xf32>
    %4 = arith.addf %2, %3 : vector<16x32xf32>
    %5 = tpu.iota {dimensions = array<i32: 0>} : vector<16x16xi32>
    %c2_i32 = arith.constant 2 : i32
    %c0_i32 = arith.constant 0 : i32
    %6 = arith.cmpi eq, %c2_i32, %c0_i32 : i32
    %c1_i32 = arith.constant 1 : i32
    %7 = arith.select %6, %c1_i32, %c2_i32 : i32
    %8 = vector.broadcast %7 : i32 to vector<16x16xi32>
    %9 = arith.remsi %5, %8 : vector<16x16xi32>
    %c0_i32_3 = arith.constant 0 : i32
    %10 = vector.broadcast %c0_i32_3 : i32 to vector<16x16xi32>
    %11 = arith.cmpi ne, %9, %10 : vector<16x16xi32>
    %c0_i32_4 = arith.constant 0 : i32
    %12 = vector.broadcast %c0_i32_4 : i32 to vector<16x16xi32>
    %13 = arith.cmpi slt, %9, %12 : vector<16x16xi32>
    %c0_i32_5 = arith.constant 0 : i32
    %14 = arith.cmpi slt, %7, %c0_i32_5 : i32
    %15 = vector.broadcast %14 : i1 to vector<16x16xi1>
    %16 = vector.broadcast %15 : vector<16x16xi1> to vector<16x16xi1>
    %17 = arith.xori %13, %16 : vector<16x16xi1>
    %18 = arith.andi %17, %11 : vector<16x16xi1>
    %19 = vector.broadcast %7 : i32 to vector<16x16xi32>
    %20 = arith.addi %9, %19 : vector<16x16xi32>
    %21 = arith.select %18, %20, %9 : vector<16x16xi1>, vector<16x16xi32>
    %22 = tpu.iota {dimensions = array<i32: 1>} : vector<16x16xi32>
    %c2_i32_6 = arith.constant 2 : i32
    %c0_i32_7 = arith.constant 0 : i32
    %23 = arith.cmpi eq, %c2_i32_6, %c0_i32_7 : i32
    %c1_i32_8 = arith.constant 1 : i32
    %24 = arith.select %23, %c1_i32_8, %c2_i32_6 : i32
    %25 = vector.broadcast %24 : i32 to vector<16x16xi32>
    %26 = arith.remsi %22, %25 : vector<16x16xi32>
    %c0_i32_9 = arith.constant 0 : i32
    %27 = vector.broadcast %c0_i32_9 : i32 to vector<16x16xi32>
    %28 = arith.cmpi ne, %26, %27 : vector<16x16xi32>
    %c0_i32_10 = arith.constant 0 : i32
    %29 = vector.broadcast %c0_i32_10 : i32 to vector<16x16xi32>
    %30 = arith.cmpi slt, %26, %29 : vector<16x16xi32>
    %c0_i32_11 = arith.constant 0 : i32
    %31 = arith.cmpi slt, %24, %c0_i32_11 : i32
    %32 = vector.broadcast %31 : i1 to vector<16x16xi1>
    %33 = vector.broadcast %32 : vector<16x16xi1> to vector<16x16xi1>
    %34 = arith.xori %30, %33 : vector<16x16xi1>
    %35 = arith.andi %34, %28 : vector<16x16xi1>
    %36 = vector.broadcast %24 : i32 to vector<16x16xi32>
    %37 = arith.addi %26, %36 : vector<16x16xi32>
    %38 = arith.select %35, %37, %26 : vector<16x16xi1>, vector<16x16xi32>
    %39 = arith.cmpi eq, %21, %38 : vector<16x16xi32>
    %40 = arith.truncf %4 : vector<16x32xf32> to vector<16x32xbf16>
    %c0_12 = arith.constant 0 : index
    %c0_13 = arith.constant 0 : index
    %c0_14 = arith.constant 0 : index
    %41 = vector.load %arg3[%c0_12, %c0_13, %c0_14] : memref<2x32x96xbf16, #tpu.memory_space<vmem>>, vector<1x32x96xbf16>
    %42 = vector.shape_cast %41 : vector<1x32x96xbf16> to vector<32x96xbf16>
    %cst_15 = arith.constant dense<0.000000e+00> : vector<16x96xf32>
    %43 = tpu.matmul %40, %42, %cst_15 {dimension_numbers = #tpu.dot_dimension_numbers<[1], [0], [0], [1], [0, 0, 1, 1], [], []>} : vector<16x32xbf16>, vector<32x96xbf16>, vector<16x96xf32> -> vector<16x96xf32>
    %c0_16 = arith.constant 0 : index
    %c0_17 = arith.constant 0 : index
    %c0_18 = arith.constant 0 : index
    %44 = vector.load %arg4[%c0_16, %c0_17, %c0_18] : memref<2x1x96xf32, #tpu.memory_space<vmem>>, vector<1x1x96xf32>
    %45 = vector.shape_cast %44 : vector<1x1x96xf32> to vector<1x96xf32>
    %46 = vector.broadcast %45 : vector<1x96xf32> to vector<16x96xf32>
    %47 = arith.addf %43, %46 : vector<16x96xf32>
    %48 = vector.extract_strided_slice %47 {offsets = [0, 0], sizes = [16, 8], strides = [1, 1]} : vector<16x96xf32> to vector<16x8xf32>
    %49 = vector.extract_strided_slice %47 {offsets = [0, 32], sizes = [16, 8], strides = [1, 1]} : vector<16x96xf32> to vector<16x8xf32>
    %50 = vector.extract_strided_slice %47 {offsets = [0, 64], sizes = [16, 8], strides = [1, 1]} : vector<16x96xf32> to vector<16x8xf32>
    %51 = arith.truncf %48 : vector<16x8xf32> to vector<16x8xbf16>
    %52 = arith.truncf %49 : vector<16x8xf32> to vector<16x8xbf16>
    %53 = tpu.transpose %52, [1, 0] : vector<16x8xbf16> -> vector<8x16xbf16>
    %cst_19 = arith.constant dense<0.000000e+00> : vector<16x16xf32>
    %54 = tpu.matmul %51, %53, %cst_19 {dimension_numbers = #tpu.dot_dimension_numbers<[1], [0], [0], [1], [0, 0, 1, 1], [], []>} : vector<16x8xbf16>, vector<8x16xbf16>, vector<16x16xf32> -> vector<16x16xf32>
    %cst_20 = arith.constant -1.000000e+30 : f32
    %55 = vector.broadcast %cst_20 : f32 to vector<16x16xf32>
    %56 = arith.select %39, %54, %55 : vector<16x16xi1>, vector<16x16xf32>
    %cst_21 = arith.constant dense<0xFF800000> : vector<16xf32>
    %57 = vector.multi_reduction <maximumf>, %56, %cst_21 [1] : vector<16x16xf32> to vector<16xf32>
    %58 = vector.shape_cast %57 : vector<16xf32> to vector<16x1xf32>
    %59 = vector.broadcast %58 : vector<16x1xf32> to vector<16x16xf32>
    %60 = arith.subf %56, %59 : vector<16x16xf32>
    %61 = math.exp %60 : vector<16x16xf32>
    %cst_22 = arith.constant dense<0.000000e+00> : vector<16xf32>
    %62 = vector.multi_reduction <add>, %61, %cst_22 [1] : vector<16x16xf32> to vector<16xf32>
    %63 = vector.shape_cast %62 : vector<16xf32> to vector<16x1xf32>
    %64 = tpu.reciprocal %63 {approx = true} : vector<16x1xf32> -> vector<16x1xf32>
    %65 = vector.broadcast %64 : vector<16x1xf32> to vector<16x16xf32>
    %66 = arith.mulf %61, %65 : vector<16x16xf32>
    %67 = arith.truncf %66 : vector<16x16xf32> to vector<16x16xbf16>
    %68 = arith.truncf %50 : vector<16x8xf32> to vector<16x8xbf16>
    %cst_23 = arith.constant dense<0.000000e+00> : vector<16x8xf32>
    %69 = tpu.matmul %67, %68, %cst_23 {dimension_numbers = #tpu.dot_dimension_numbers<[1], [0], [0], [1], [0, 0, 1, 1], [], []>} : vector<16x16xbf16>, vector<16x8xbf16>, vector<16x8xf32> -> vector<16x8xf32>
    %70 = vector.extract_strided_slice %47 {offsets = [0, 8], sizes = [16, 8], strides = [1, 1]} : vector<16x96xf32> to vector<16x8xf32>
    %71 = vector.extract_strided_slice %47 {offsets = [0, 40], sizes = [16, 8], strides = [1, 1]} : vector<16x96xf32> to vector<16x8xf32>
    %72 = vector.extract_strided_slice %47 {offsets = [0, 72], sizes = [16, 8], strides = [1, 1]} : vector<16x96xf32> to vector<16x8xf32>
    %73 = arith.truncf %70 : vector<16x8xf32> to vector<16x8xbf16>
    %74 = arith.truncf %71 : vector<16x8xf32> to vector<16x8xbf16>
    %75 = tpu.transpose %74, [1, 0] : vector<16x8xbf16> -> vector<8x16xbf16>
    %cst_24 = arith.constant dense<0.000000e+00> : vector<16x16xf32>
    %76 = tpu.matmul %73, %75, %cst_24 {dimension_numbers = #tpu.dot_dimension_numbers<[1], [0], [0], [1], [0, 0, 1, 1], [], []>} : vector<16x8xbf16>, vector<8x16xbf16>, vector<16x16xf32> -> vector<16x16xf32>
    %cst_25 = arith.constant -1.000000e+30 : f32
    %77 = vector.broadcast %cst_25 : f32 to vector<16x16xf32>
    %78 = arith.select %39, %76, %77 : vector<16x16xi1>, vector<16x16xf32>
    %cst_26 = arith.constant dense<0xFF800000> : vector<16xf32>
    %79 = vector.multi_reduction <maximumf>, %78, %cst_26 [1] : vector<16x16xf32> to vector<16xf32>
    %80 = vector.shape_cast %79 : vector<16xf32> to vector<16x1xf32>
    %81 = vector.broadcast %80 : vector<16x1xf32> to vector<16x16xf32>
    %82 = arith.subf %78, %81 : vector<16x16xf32>
    %83 = math.exp %82 : vector<16x16xf32>
    %cst_27 = arith.constant dense<0.000000e+00> : vector<16xf32>
    %84 = vector.multi_reduction <add>, %83, %cst_27 [1] : vector<16x16xf32> to vector<16xf32>
    %85 = vector.shape_cast %84 : vector<16xf32> to vector<16x1xf32>
    %86 = tpu.reciprocal %85 {approx = true} : vector<16x1xf32> -> vector<16x1xf32>
    %87 = vector.broadcast %86 : vector<16x1xf32> to vector<16x16xf32>
    %88 = arith.mulf %83, %87 : vector<16x16xf32>
    %89 = arith.truncf %88 : vector<16x16xf32> to vector<16x16xbf16>
    %90 = arith.truncf %72 : vector<16x8xf32> to vector<16x8xbf16>
    %cst_28 = arith.constant dense<0.000000e+00> : vector<16x8xf32>
    %91 = tpu.matmul %89, %90, %cst_28 {dimension_numbers = #tpu.dot_dimension_numbers<[1], [0], [0], [1], [0, 0, 1, 1], [], []>} : vector<16x16xbf16>, vector<16x8xbf16>, vector<16x8xf32> -> vector<16x8xf32>
    %92 = vector.extract_strided_slice %47 {offsets = [0, 16], sizes = [16, 8], strides = [1, 1]} : vector<16x96xf32> to vector<16x8xf32>
    %93 = vector.extract_strided_slice %47 {offsets = [0, 48], sizes = [16, 8], strides = [1, 1]} : vector<16x96xf32> to vector<16x8xf32>
    %94 = vector.extract_strided_slice %47 {offsets = [0, 80], sizes = [16, 8], strides = [1, 1]} : vector<16x96xf32> to vector<16x8xf32>
    %95 = arith.truncf %92 : vector<16x8xf32> to vector<16x8xbf16>
    %96 = arith.truncf %93 : vector<16x8xf32> to vector<16x8xbf16>
    %97 = tpu.transpose %96, [1, 0] : vector<16x8xbf16> -> vector<8x16xbf16>
    %cst_29 = arith.constant dense<0.000000e+00> : vector<16x16xf32>
    %98 = tpu.matmul %95, %97, %cst_29 {dimension_numbers = #tpu.dot_dimension_numbers<[1], [0], [0], [1], [0, 0, 1, 1], [], []>} : vector<16x8xbf16>, vector<8x16xbf16>, vector<16x16xf32> -> vector<16x16xf32>
    %cst_30 = arith.constant -1.000000e+30 : f32
    %99 = vector.broadcast %cst_30 : f32 to vector<16x16xf32>
    %100 = arith.select %39, %98, %99 : vector<16x16xi1>, vector<16x16xf32>
    %cst_31 = arith.constant dense<0xFF800000> : vector<16xf32>
    %101 = vector.multi_reduction <maximumf>, %100, %cst_31 [1] : vector<16x16xf32> to vector<16xf32>
    %102 = vector.shape_cast %101 : vector<16xf32> to vector<16x1xf32>
    %103 = vector.broadcast %102 : vector<16x1xf32> to vector<16x16xf32>
    %104 = arith.subf %100, %103 : vector<16x16xf32>
    %105 = math.exp %104 : vector<16x16xf32>
    %cst_32 = arith.constant dense<0.000000e+00> : vector<16xf32>
    %106 = vector.multi_reduction <add>, %105, %cst_32 [1] : vector<16x16xf32> to vector<16xf32>
    %107 = vector.shape_cast %106 : vector<16xf32> to vector<16x1xf32>
    %108 = tpu.reciprocal %107 {approx = true} : vector<16x1xf32> -> vector<16x1xf32>
    %109 = vector.broadcast %108 : vector<16x1xf32> to vector<16x16xf32>
    %110 = arith.mulf %105, %109 : vector<16x16xf32>
    %111 = arith.truncf %110 : vector<16x16xf32> to vector<16x16xbf16>
    %112 = arith.truncf %94 : vector<16x8xf32> to vector<16x8xbf16>
    %cst_33 = arith.constant dense<0.000000e+00> : vector<16x8xf32>
    %113 = tpu.matmul %111, %112, %cst_33 {dimension_numbers = #tpu.dot_dimension_numbers<[1], [0], [0], [1], [0, 0, 1, 1], [], []>} : vector<16x16xbf16>, vector<16x8xbf16>, vector<16x8xf32> -> vector<16x8xf32>
    %114 = vector.extract_strided_slice %47 {offsets = [0, 24], sizes = [16, 8], strides = [1, 1]} : vector<16x96xf32> to vector<16x8xf32>
    %115 = vector.extract_strided_slice %47 {offsets = [0, 56], sizes = [16, 8], strides = [1, 1]} : vector<16x96xf32> to vector<16x8xf32>
    %116 = vector.extract_strided_slice %47 {offsets = [0, 88], sizes = [16, 8], strides = [1, 1]} : vector<16x96xf32> to vector<16x8xf32>
    %117 = arith.truncf %114 : vector<16x8xf32> to vector<16x8xbf16>
    %118 = arith.truncf %115 : vector<16x8xf32> to vector<16x8xbf16>
    %119 = tpu.transpose %118, [1, 0] : vector<16x8xbf16> -> vector<8x16xbf16>
    %cst_34 = arith.constant dense<0.000000e+00> : vector<16x16xf32>
    %120 = tpu.matmul %117, %119, %cst_34 {dimension_numbers = #tpu.dot_dimension_numbers<[1], [0], [0], [1], [0, 0, 1, 1], [], []>} : vector<16x8xbf16>, vector<8x16xbf16>, vector<16x16xf32> -> vector<16x16xf32>
    %cst_35 = arith.constant -1.000000e+30 : f32
    %121 = vector.broadcast %cst_35 : f32 to vector<16x16xf32>
    %122 = arith.select %39, %120, %121 : vector<16x16xi1>, vector<16x16xf32>
    %cst_36 = arith.constant dense<0xFF800000> : vector<16xf32>
    %123 = vector.multi_reduction <maximumf>, %122, %cst_36 [1] : vector<16x16xf32> to vector<16xf32>
    %124 = vector.shape_cast %123 : vector<16xf32> to vector<16x1xf32>
    %125 = vector.broadcast %124 : vector<16x1xf32> to vector<16x16xf32>
    %126 = arith.subf %122, %125 : vector<16x16xf32>
    %127 = math.exp %126 : vector<16x16xf32>
    %cst_37 = arith.constant dense<0.000000e+00> : vector<16xf32>
    %128 = vector.multi_reduction <add>, %127, %cst_37 [1] : vector<16x16xf32> to vector<16xf32>
    %129 = vector.shape_cast %128 : vector<16xf32> to vector<16x1xf32>
    %130 = tpu.reciprocal %129 {approx = true} : vector<16x1xf32> -> vector<16x1xf32>
    %131 = vector.broadcast %130 : vector<16x1xf32> to vector<16x16xf32>
    %132 = arith.mulf %127, %131 : vector<16x16xf32>
    %133 = arith.truncf %132 : vector<16x16xf32> to vector<16x16xbf16>
    %134 = arith.truncf %116 : vector<16x8xf32> to vector<16x8xbf16>
    %cst_38 = arith.constant dense<0.000000e+00> : vector<16x8xf32>
    %135 = tpu.matmul %133, %134, %cst_38 {dimension_numbers = #tpu.dot_dimension_numbers<[1], [0], [0], [1], [0, 0, 1, 1], [], []>} : vector<16x16xbf16>, vector<16x8xbf16>, vector<16x8xf32> -> vector<16x8xf32>
    %136 = tpu.concatenate %69, %91, %113, %135 in 1 : vector<16x8xf32>, vector<16x8xf32>, vector<16x8xf32>, vector<16x8xf32> -> vector<16x32xf32>
    %137 = arith.truncf %136 : vector<16x32xf32> to vector<16x32xbf16>
    %c0_39 = arith.constant 0 : index
    %c0_40 = arith.constant 0 : index
    %c0_41 = arith.constant 0 : index
    %138 = vector.load %arg5[%c0_39, %c0_40, %c0_41] : memref<2x32x32xbf16, #tpu.memory_space<vmem>>, vector<1x32x32xbf16>
    %139 = vector.shape_cast %138 : vector<1x32x32xbf16> to vector<32x32xbf16>
    %cst_42 = arith.constant dense<0.000000e+00> : vector<16x32xf32>
    %140 = tpu.matmul %137, %139, %cst_42 {dimension_numbers = #tpu.dot_dimension_numbers<[1], [0], [0], [1], [0, 0, 1, 1], [], []>} : vector<16x32xbf16>, vector<32x32xbf16>, vector<16x32xf32> -> vector<16x32xf32>
    %c0_43 = arith.constant 0 : index
    %c0_44 = arith.constant 0 : index
    %c0_45 = arith.constant 0 : index
    %141 = vector.load %arg6[%c0_43, %c0_44, %c0_45] : memref<2x1x32xf32, #tpu.memory_space<vmem>>, vector<1x1x32xf32>
    %142 = vector.shape_cast %141 : vector<1x1x32xf32> to vector<1x32xf32>
    %143 = vector.broadcast %142 : vector<1x32xf32> to vector<16x32xf32>
    %144 = arith.addf %140, %143 : vector<16x32xf32>
    %145 = arith.addf %4, %144 : vector<16x32xf32>
    %c0_46 = arith.constant 0 : index
    %c0_47 = arith.constant 0 : index
    %c0_48 = arith.constant 0 : index
    %146 = vector.load %arg11[%c0_46, %c0_47, %c0_48] : memref<2x1x32xf32, #tpu.memory_space<vmem>>, vector<1x1x32xf32>
    %147 = vector.shape_cast %146 : vector<1x1x32xf32> to vector<1x32xf32>
    %c0_49 = arith.constant 0 : index
    %c0_50 = arith.constant 0 : index
    %c0_51 = arith.constant 0 : index
    %148 = vector.load %arg12[%c0_49, %c0_50, %c0_51] : memref<2x1x32xf32, #tpu.memory_space<vmem>>, vector<1x1x32xf32>
    %149 = vector.shape_cast %148 : vector<1x1x32xf32> to vector<1x32xf32>
    %cst_52 = arith.constant dense<0.000000e+00> : vector<16xf32>
    %150 = vector.multi_reduction <add>, %145, %cst_52 [1] : vector<16x32xf32> to vector<16xf32>
    %151 = vector.shape_cast %150 : vector<16xf32> to vector<16x1xf32>
    %cst_53 = arith.constant 3.200000e+01 : f32
    %152 = vector.broadcast %cst_53 : f32 to vector<16x1xf32>
    %153 = arith.divf %151, %152 : vector<16x1xf32>
    %154 = vector.broadcast %153 : vector<16x1xf32> to vector<16x32xf32>
    %155 = arith.subf %145, %154 : vector<16x32xf32>
    %156 = arith.mulf %155, %155 : vector<16x32xf32>
    %cst_54 = arith.constant dense<0.000000e+00> : vector<16xf32>
    %157 = vector.multi_reduction <add>, %156, %cst_54 [1] : vector<16x32xf32> to vector<16xf32>
    %158 = vector.shape_cast %157 : vector<16xf32> to vector<16x1xf32>
    %cst_55 = arith.constant 3.200000e+01 : f32
    %159 = vector.broadcast %cst_55 : f32 to vector<16x1xf32>
    %160 = arith.divf %158, %159 : vector<16x1xf32>
    %161 = vector.broadcast %153 : vector<16x1xf32> to vector<16x32xf32>
    %162 = arith.subf %145, %161 : vector<16x32xf32>
    %cst_56 = arith.constant 9.99999974E-6 : f32
    %163 = vector.broadcast %cst_56 : f32 to vector<16x1xf32>
    %164 = arith.addf %160, %163 : vector<16x1xf32>
    %165 = math.rsqrt %164 : vector<16x1xf32>
    %166 = vector.broadcast %165 : vector<16x1xf32> to vector<16x32xf32>
    %167 = arith.mulf %162, %166 : vector<16x32xf32>
    %168 = vector.broadcast %147 : vector<1x32xf32> to vector<16x32xf32>
    %169 = arith.mulf %167, %168 : vector<16x32xf32>
    %170 = vector.broadcast %149 : vector<1x32xf32> to vector<16x32xf32>
    %171 = arith.addf %169, %170 : vector<16x32xf32>
    %172 = arith.truncf %171 : vector<16x32xf32> to vector<16x32xbf16>
    %c0_57 = arith.constant 0 : index
    %c0_58 = arith.constant 0 : index
    %c0_59 = arith.constant 0 : index
    %173 = vector.load %arg7[%c0_57, %c0_58, %c0_59] : memref<2x32x64xbf16, #tpu.memory_space<vmem>>, vector<1x32x64xbf16>
    %174 = vector.shape_cast %173 : vector<1x32x64xbf16> to vector<32x64xbf16>
    %cst_60 = arith.constant dense<0.000000e+00> : vector<16x64xf32>
    %175 = tpu.matmul %172, %174, %cst_60 {dimension_numbers = #tpu.dot_dimension_numbers<[1], [0], [0], [1], [0, 0, 1, 1], [], []>} : vector<16x32xbf16>, vector<32x64xbf16>, vector<16x64xf32> -> vector<16x64xf32>
    %c0_61 = arith.constant 0 : index
    %c0_62 = arith.constant 0 : index
    %c0_63 = arith.constant 0 : index
    %176 = vector.load %arg8[%c0_61, %c0_62, %c0_63] : memref<2x1x64xf32, #tpu.memory_space<vmem>>, vector<1x1x64xf32>
    %177 = vector.shape_cast %176 : vector<1x1x64xf32> to vector<1x64xf32>
    %178 = vector.broadcast %177 : vector<1x64xf32> to vector<16x64xf32>
    %179 = arith.addf %175, %178 : vector<16x64xf32>
    %cst_64 = arith.constant 0.000000e+00 : f32
    %180 = vector.broadcast %cst_64 : f32 to vector<16x64xf32>
    %181 = arith.maximumf %179, %180 : vector<16x64xf32>
    %182 = arith.truncf %181 : vector<16x64xf32> to vector<16x64xbf16>
    %c0_65 = arith.constant 0 : index
    %c0_66 = arith.constant 0 : index
    %c0_67 = arith.constant 0 : index
    %183 = vector.load %arg9[%c0_65, %c0_66, %c0_67] : memref<2x64x32xbf16, #tpu.memory_space<vmem>>, vector<1x64x32xbf16>
    %184 = vector.shape_cast %183 : vector<1x64x32xbf16> to vector<64x32xbf16>
    %cst_68 = arith.constant dense<0.000000e+00> : vector<16x32xf32>
    %185 = tpu.matmul %182, %184, %cst_68 {dimension_numbers = #tpu.dot_dimension_numbers<[1], [0], [0], [1], [0, 0, 1, 1], [], []>} : vector<16x64xbf16>, vector<64x32xbf16>, vector<16x32xf32> -> vector<16x32xf32>
    %c0_69 = arith.constant 0 : index
    %c0_70 = arith.constant 0 : index
    %c0_71 = arith.constant 0 : index
    %186 = vector.load %arg10[%c0_69, %c0_70, %c0_71] : memref<2x1x32xf32, #tpu.memory_space<vmem>>, vector<1x1x32xf32>
    %187 = vector.shape_cast %186 : vector<1x1x32xf32> to vector<1x32xf32>
    %188 = vector.broadcast %187 : vector<1x32xf32> to vector<16x32xf32>
    %189 = arith.addf %185, %188 : vector<16x32xf32>
    %190 = arith.addf %171, %189 : vector<16x32xf32>
    %c0_72 = arith.constant 0 : index
    %c0_73 = arith.constant 0 : index
    %c0_74 = arith.constant 0 : index
    %191 = vector.load %arg13[%c0_72, %c0_73, %c0_74] : memref<2x1x32xf32, #tpu.memory_space<vmem>>, vector<1x1x32xf32>
    %192 = vector.shape_cast %191 : vector<1x1x32xf32> to vector<1x32xf32>
    %c0_75 = arith.constant 0 : index
    %c0_76 = arith.constant 0 : index
    %c0_77 = arith.constant 0 : index
    %193 = vector.load %arg14[%c0_75, %c0_76, %c0_77] : memref<2x1x32xf32, #tpu.memory_space<vmem>>, vector<1x1x32xf32>
    %194 = vector.shape_cast %193 : vector<1x1x32xf32> to vector<1x32xf32>
    %cst_78 = arith.constant dense<0.000000e+00> : vector<16xf32>
    %195 = vector.multi_reduction <add>, %190, %cst_78 [1] : vector<16x32xf32> to vector<16xf32>
    %196 = vector.shape_cast %195 : vector<16xf32> to vector<16x1xf32>
    %cst_79 = arith.constant 3.200000e+01 : f32
    %197 = vector.broadcast %cst_79 : f32 to vector<16x1xf32>
    %198 = arith.divf %196, %197 : vector<16x1xf32>
    %199 = vector.broadcast %198 : vector<16x1xf32> to vector<16x32xf32>
    %200 = arith.subf %190, %199 : vector<16x32xf32>
    %201 = arith.mulf %200, %200 : vector<16x32xf32>
    %cst_80 = arith.constant dense<0.000000e+00> : vector<16xf32>
    %202 = vector.multi_reduction <add>, %201, %cst_80 [1] : vector<16x32xf32> to vector<16xf32>
    %203 = vector.shape_cast %202 : vector<16xf32> to vector<16x1xf32>
    %cst_81 = arith.constant 3.200000e+01 : f32
    %204 = vector.broadcast %cst_81 : f32 to vector<16x1xf32>
    %205 = arith.divf %203, %204 : vector<16x1xf32>
    %206 = vector.broadcast %198 : vector<16x1xf32> to vector<16x32xf32>
    %207 = arith.subf %190, %206 : vector<16x32xf32>
    %cst_82 = arith.constant 9.99999974E-6 : f32
    %208 = vector.broadcast %cst_82 : f32 to vector<16x1xf32>
    %209 = arith.addf %205, %208 : vector<16x1xf32>
    %210 = math.rsqrt %209 : vector<16x1xf32>
    %211 = vector.broadcast %210 : vector<16x1xf32> to vector<16x32xf32>
    %212 = arith.mulf %207, %211 : vector<16x32xf32>
    %213 = vector.broadcast %192 : vector<1x32xf32> to vector<16x32xf32>
    %214 = arith.mulf %212, %213 : vector<16x32xf32>
    %215 = vector.broadcast %194 : vector<1x32xf32> to vector<16x32xf32>
    %216 = arith.addf %214, %215 : vector<16x32xf32>
    %217 = arith.truncf %216 : vector<16x32xf32> to vector<16x32xbf16>
    %c1 = arith.constant 1 : index
    %c0_83 = arith.constant 0 : index
    %c0_84 = arith.constant 0 : index
    %218 = vector.load %arg3[%c1, %c0_83, %c0_84] : memref<2x32x96xbf16, #tpu.memory_space<vmem>>, vector<1x32x96xbf16>
    %219 = vector.shape_cast %218 : vector<1x32x96xbf16> to vector<32x96xbf16>
    %cst_85 = arith.constant dense<0.000000e+00> : vector<16x96xf32>
    %220 = tpu.matmul %217, %219, %cst_85 {dimension_numbers = #tpu.dot_dimension_numbers<[1], [0], [0], [1], [0, 0, 1, 1], [], []>} : vector<16x32xbf16>, vector<32x96xbf16>, vector<16x96xf32> -> vector<16x96xf32>
    %c1_86 = arith.constant 1 : index
    %c0_87 = arith.constant 0 : index
    %c0_88 = arith.constant 0 : index
    %221 = vector.load %arg4[%c1_86, %c0_87, %c0_88] : memref<2x1x96xf32, #tpu.memory_space<vmem>>, vector<1x1x96xf32>
    %222 = vector.shape_cast %221 : vector<1x1x96xf32> to vector<1x96xf32>
    %223 = vector.broadcast %222 : vector<1x96xf32> to vector<16x96xf32>
    %224 = arith.addf %220, %223 : vector<16x96xf32>
    %225 = vector.extract_strided_slice %224 {offsets = [0, 0], sizes = [16, 8], strides = [1, 1]} : vector<16x96xf32> to vector<16x8xf32>
    %226 = vector.extract_strided_slice %224 {offsets = [0, 32], sizes = [16, 8], strides = [1, 1]} : vector<16x96xf32> to vector<16x8xf32>
    %227 = vector.extract_strided_slice %224 {offsets = [0, 64], sizes = [16, 8], strides = [1, 1]} : vector<16x96xf32> to vector<16x8xf32>
    %228 = arith.truncf %225 : vector<16x8xf32> to vector<16x8xbf16>
    %229 = arith.truncf %226 : vector<16x8xf32> to vector<16x8xbf16>
    %230 = tpu.transpose %229, [1, 0] : vector<16x8xbf16> -> vector<8x16xbf16>
    %cst_89 = arith.constant dense<0.000000e+00> : vector<16x16xf32>
    %231 = tpu.matmul %228, %230, %cst_89 {dimension_numbers = #tpu.dot_dimension_numbers<[1], [0], [0], [1], [0, 0, 1, 1], [], []>} : vector<16x8xbf16>, vector<8x16xbf16>, vector<16x16xf32> -> vector<16x16xf32>
    %cst_90 = arith.constant -1.000000e+30 : f32
    %232 = vector.broadcast %cst_90 : f32 to vector<16x16xf32>
    %233 = arith.select %39, %231, %232 : vector<16x16xi1>, vector<16x16xf32>
    %cst_91 = arith.constant dense<0xFF800000> : vector<16xf32>
    %234 = vector.multi_reduction <maximumf>, %233, %cst_91 [1] : vector<16x16xf32> to vector<16xf32>
    %235 = vector.shape_cast %234 : vector<16xf32> to vector<16x1xf32>
    %236 = vector.broadcast %235 : vector<16x1xf32> to vector<16x16xf32>
    %237 = arith.subf %233, %236 : vector<16x16xf32>
    %238 = math.exp %237 : vector<16x16xf32>
    %cst_92 = arith.constant dense<0.000000e+00> : vector<16xf32>
    %239 = vector.multi_reduction <add>, %238, %cst_92 [1] : vector<16x16xf32> to vector<16xf32>
    %240 = vector.shape_cast %239 : vector<16xf32> to vector<16x1xf32>
    %241 = tpu.reciprocal %240 {approx = true} : vector<16x1xf32> -> vector<16x1xf32>
    %242 = vector.broadcast %241 : vector<16x1xf32> to vector<16x16xf32>
    %243 = arith.mulf %238, %242 : vector<16x16xf32>
    %244 = arith.truncf %243 : vector<16x16xf32> to vector<16x16xbf16>
    %245 = arith.truncf %227 : vector<16x8xf32> to vector<16x8xbf16>
    %cst_93 = arith.constant dense<0.000000e+00> : vector<16x8xf32>
    %246 = tpu.matmul %244, %245, %cst_93 {dimension_numbers = #tpu.dot_dimension_numbers<[1], [0], [0], [1], [0, 0, 1, 1], [], []>} : vector<16x16xbf16>, vector<16x8xbf16>, vector<16x8xf32> -> vector<16x8xf32>
    %247 = vector.extract_strided_slice %224 {offsets = [0, 8], sizes = [16, 8], strides = [1, 1]} : vector<16x96xf32> to vector<16x8xf32>
    %248 = vector.extract_strided_slice %224 {offsets = [0, 40], sizes = [16, 8], strides = [1, 1]} : vector<16x96xf32> to vector<16x8xf32>
    %249 = vector.extract_strided_slice %224 {offsets = [0, 72], sizes = [16, 8], strides = [1, 1]} : vector<16x96xf32> to vector<16x8xf32>
    %250 = arith.truncf %247 : vector<16x8xf32> to vector<16x8xbf16>
    %251 = arith.truncf %248 : vector<16x8xf32> to vector<16x8xbf16>
    %252 = tpu.transpose %251, [1, 0] : vector<16x8xbf16> -> vector<8x16xbf16>
    %cst_94 = arith.constant dense<0.000000e+00> : vector<16x16xf32>
    %253 = tpu.matmul %250, %252, %cst_94 {dimension_numbers = #tpu.dot_dimension_numbers<[1], [0], [0], [1], [0, 0, 1, 1], [], []>} : vector<16x8xbf16>, vector<8x16xbf16>, vector<16x16xf32> -> vector<16x16xf32>
    %cst_95 = arith.constant -1.000000e+30 : f32
    %254 = vector.broadcast %cst_95 : f32 to vector<16x16xf32>
    %255 = arith.select %39, %253, %254 : vector<16x16xi1>, vector<16x16xf32>
    %cst_96 = arith.constant dense<0xFF800000> : vector<16xf32>
    %256 = vector.multi_reduction <maximumf>, %255, %cst_96 [1] : vector<16x16xf32> to vector<16xf32>
    %257 = vector.shape_cast %256 : vector<16xf32> to vector<16x1xf32>
    %258 = vector.broadcast %257 : vector<16x1xf32> to vector<16x16xf32>
    %259 = arith.subf %255, %258 : vector<16x16xf32>
    %260 = math.exp %259 : vector<16x16xf32>
    %cst_97 = arith.constant dense<0.000000e+00> : vector<16xf32>
    %261 = vector.multi_reduction <add>, %260, %cst_97 [1] : vector<16x16xf32> to vector<16xf32>
    %262 = vector.shape_cast %261 : vector<16xf32> to vector<16x1xf32>
    %263 = tpu.reciprocal %262 {approx = true} : vector<16x1xf32> -> vector<16x1xf32>
    %264 = vector.broadcast %263 : vector<16x1xf32> to vector<16x16xf32>
    %265 = arith.mulf %260, %264 : vector<16x16xf32>
    %266 = arith.truncf %265 : vector<16x16xf32> to vector<16x16xbf16>
    %267 = arith.truncf %249 : vector<16x8xf32> to vector<16x8xbf16>
    %cst_98 = arith.constant dense<0.000000e+00> : vector<16x8xf32>
    %268 = tpu.matmul %266, %267, %cst_98 {dimension_numbers = #tpu.dot_dimension_numbers<[1], [0], [0], [1], [0, 0, 1, 1], [], []>} : vector<16x16xbf16>, vector<16x8xbf16>, vector<16x8xf32> -> vector<16x8xf32>
    %269 = vector.extract_strided_slice %224 {offsets = [0, 16], sizes = [16, 8], strides = [1, 1]} : vector<16x96xf32> to vector<16x8xf32>
    %270 = vector.extract_strided_slice %224 {offsets = [0, 48], sizes = [16, 8], strides = [1, 1]} : vector<16x96xf32> to vector<16x8xf32>
    %271 = vector.extract_strided_slice %224 {offsets = [0, 80], sizes = [16, 8], strides = [1, 1]} : vector<16x96xf32> to vector<16x8xf32>
    %272 = arith.truncf %269 : vector<16x8xf32> to vector<16x8xbf16>
    %273 = arith.truncf %270 : vector<16x8xf32> to vector<16x8xbf16>
    %274 = tpu.transpose %273, [1, 0] : vector<16x8xbf16> -> vector<8x16xbf16>
    %cst_99 = arith.constant dense<0.000000e+00> : vector<16x16xf32>
    %275 = tpu.matmul %272, %274, %cst_99 {dimension_numbers = #tpu.dot_dimension_numbers<[1], [0], [0], [1], [0, 0, 1, 1], [], []>} : vector<16x8xbf16>, vector<8x16xbf16>, vector<16x16xf32> -> vector<16x16xf32>
    %cst_100 = arith.constant -1.000000e+30 : f32
    %276 = vector.broadcast %cst_100 : f32 to vector<16x16xf32>
    %277 = arith.select %39, %275, %276 : vector<16x16xi1>, vector<16x16xf32>
    %cst_101 = arith.constant dense<0xFF800000> : vector<16xf32>
    %278 = vector.multi_reduction <maximumf>, %277, %cst_101 [1] : vector<16x16xf32> to vector<16xf32>
    %279 = vector.shape_cast %278 : vector<16xf32> to vector<16x1xf32>
    %280 = vector.broadcast %279 : vector<16x1xf32> to vector<16x16xf32>
    %281 = arith.subf %277, %280 : vector<16x16xf32>
    %282 = math.exp %281 : vector<16x16xf32>
    %cst_102 = arith.constant dense<0.000000e+00> : vector<16xf32>
    %283 = vector.multi_reduction <add>, %282, %cst_102 [1] : vector<16x16xf32> to vector<16xf32>
    %284 = vector.shape_cast %283 : vector<16xf32> to vector<16x1xf32>
    %285 = tpu.reciprocal %284 {approx = true} : vector<16x1xf32> -> vector<16x1xf32>
    %286 = vector.broadcast %285 : vector<16x1xf32> to vector<16x16xf32>
    %287 = arith.mulf %282, %286 : vector<16x16xf32>
    %288 = arith.truncf %287 : vector<16x16xf32> to vector<16x16xbf16>
    %289 = arith.truncf %271 : vector<16x8xf32> to vector<16x8xbf16>
    %cst_103 = arith.constant dense<0.000000e+00> : vector<16x8xf32>
    %290 = tpu.matmul %288, %289, %cst_103 {dimension_numbers = #tpu.dot_dimension_numbers<[1], [0], [0], [1], [0, 0, 1, 1], [], []>} : vector<16x16xbf16>, vector<16x8xbf16>, vector<16x8xf32> -> vector<16x8xf32>
    %291 = vector.extract_strided_slice %224 {offsets = [0, 24], sizes = [16, 8], strides = [1, 1]} : vector<16x96xf32> to vector<16x8xf32>
    %292 = vector.extract_strided_slice %224 {offsets = [0, 56], sizes = [16, 8], strides = [1, 1]} : vector<16x96xf32> to vector<16x8xf32>
    %293 = vector.extract_strided_slice %224 {offsets = [0, 88], sizes = [16, 8], strides = [1, 1]} : vector<16x96xf32> to vector<16x8xf32>
    %294 = arith.truncf %291 : vector<16x8xf32> to vector<16x8xbf16>
    %295 = arith.truncf %292 : vector<16x8xf32> to vector<16x8xbf16>
    %296 = tpu.transpose %295, [1, 0] : vector<16x8xbf16> -> vector<8x16xbf16>
    %cst_104 = arith.constant dense<0.000000e+00> : vector<16x16xf32>
    %297 = tpu.matmul %294, %296, %cst_104 {dimension_numbers = #tpu.dot_dimension_numbers<[1], [0], [0], [1], [0, 0, 1, 1], [], []>} : vector<16x8xbf16>, vector<8x16xbf16>, vector<16x16xf32> -> vector<16x16xf32>
    %cst_105 = arith.constant -1.000000e+30 : f32
    %298 = vector.broadcast %cst_105 : f32 to vector<16x16xf32>
    %299 = arith.select %39, %297, %298 : vector<16x16xi1>, vector<16x16xf32>
    %cst_106 = arith.constant dense<0xFF800000> : vector<16xf32>
    %300 = vector.multi_reduction <maximumf>, %299, %cst_106 [1] : vector<16x16xf32> to vector<16xf32>
    %301 = vector.shape_cast %300 : vector<16xf32> to vector<16x1xf32>
    %302 = vector.broadcast %301 : vector<16x1xf32> to vector<16x16xf32>
    %303 = arith.subf %299, %302 : vector<16x16xf32>
    %304 = math.exp %303 : vector<16x16xf32>
    %cst_107 = arith.constant dense<0.000000e+00> : vector<16xf32>
    %305 = vector.multi_reduction <add>, %304, %cst_107 [1] : vector<16x16xf32> to vector<16xf32>
    %306 = vector.shape_cast %305 : vector<16xf32> to vector<16x1xf32>
    %307 = tpu.reciprocal %306 {approx = true} : vector<16x1xf32> -> vector<16x1xf32>
    %308 = vector.broadcast %307 : vector<16x1xf32> to vector<16x16xf32>
    %309 = arith.mulf %304, %308 : vector<16x16xf32>
    %310 = arith.truncf %309 : vector<16x16xf32> to vector<16x16xbf16>
    %311 = arith.truncf %293 : vector<16x8xf32> to vector<16x8xbf16>
    %cst_108 = arith.constant dense<0.000000e+00> : vector<16x8xf32>
    %312 = tpu.matmul %310, %311, %cst_108 {dimension_numbers = #tpu.dot_dimension_numbers<[1], [0], [0], [1], [0, 0, 1, 1], [], []>} : vector<16x16xbf16>, vector<16x8xbf16>, vector<16x8xf32> -> vector<16x8xf32>
    %313 = tpu.concatenate %246, %268, %290, %312 in 1 : vector<16x8xf32>, vector<16x8xf32>, vector<16x8xf32>, vector<16x8xf32> -> vector<16x32xf32>
    %314 = arith.truncf %313 : vector<16x32xf32> to vector<16x32xbf16>
    %c1_109 = arith.constant 1 : index
    %c0_110 = arith.constant 0 : index
    %c0_111 = arith.constant 0 : index
    %315 = vector.load %arg5[%c1_109, %c0_110, %c0_111] : memref<2x32x32xbf16, #tpu.memory_space<vmem>>, vector<1x32x32xbf16>
    %316 = vector.shape_cast %315 : vector<1x32x32xbf16> to vector<32x32xbf16>
    %cst_112 = arith.constant dense<0.000000e+00> : vector<16x32xf32>
    %317 = tpu.matmul %314, %316, %cst_112 {dimension_numbers = #tpu.dot_dimension_numbers<[1], [0], [0], [1], [0, 0, 1, 1], [], []>} : vector<16x32xbf16>, vector<32x32xbf16>, vector<16x32xf32> -> vector<16x32xf32>
    %c1_113 = arith.constant 1 : index
    %c0_114 = arith.constant 0 : index
    %c0_115 = arith.constant 0 : index
    %318 = vector.load %arg6[%c1_113, %c0_114, %c0_115] : memref<2x1x32xf32, #tpu.memory_space<vmem>>, vector<1x1x32xf32>
    %319 = vector.shape_cast %318 : vector<1x1x32xf32> to vector<1x32xf32>
    %320 = vector.broadcast %319 : vector<1x32xf32> to vector<16x32xf32>
    %321 = arith.addf %317, %320 : vector<16x32xf32>
    %322 = arith.addf %216, %321 : vector<16x32xf32>
    %c1_116 = arith.constant 1 : index
    %c0_117 = arith.constant 0 : index
    %c0_118 = arith.constant 0 : index
    %323 = vector.load %arg11[%c1_116, %c0_117, %c0_118] : memref<2x1x32xf32, #tpu.memory_space<vmem>>, vector<1x1x32xf32>
    %324 = vector.shape_cast %323 : vector<1x1x32xf32> to vector<1x32xf32>
    %c1_119 = arith.constant 1 : index
    %c0_120 = arith.constant 0 : index
    %c0_121 = arith.constant 0 : index
    %325 = vector.load %arg12[%c1_119, %c0_120, %c0_121] : memref<2x1x32xf32, #tpu.memory_space<vmem>>, vector<1x1x32xf32>
    %326 = vector.shape_cast %325 : vector<1x1x32xf32> to vector<1x32xf32>
    %cst_122 = arith.constant dense<0.000000e+00> : vector<16xf32>
    %327 = vector.multi_reduction <add>, %322, %cst_122 [1] : vector<16x32xf32> to vector<16xf32>
    %328 = vector.shape_cast %327 : vector<16xf32> to vector<16x1xf32>
    %cst_123 = arith.constant 3.200000e+01 : f32
    %329 = vector.broadcast %cst_123 : f32 to vector<16x1xf32>
    %330 = arith.divf %328, %329 : vector<16x1xf32>
    %331 = vector.broadcast %330 : vector<16x1xf32> to vector<16x32xf32>
    %332 = arith.subf %322, %331 : vector<16x32xf32>
    %333 = arith.mulf %332, %332 : vector<16x32xf32>
    %cst_124 = arith.constant dense<0.000000e+00> : vector<16xf32>
    %334 = vector.multi_reduction <add>, %333, %cst_124 [1] : vector<16x32xf32> to vector<16xf32>
    %335 = vector.shape_cast %334 : vector<16xf32> to vector<16x1xf32>
    %cst_125 = arith.constant 3.200000e+01 : f32
    %336 = vector.broadcast %cst_125 : f32 to vector<16x1xf32>
    %337 = arith.divf %335, %336 : vector<16x1xf32>
    %338 = vector.broadcast %330 : vector<16x1xf32> to vector<16x32xf32>
    %339 = arith.subf %322, %338 : vector<16x32xf32>
    %cst_126 = arith.constant 9.99999974E-6 : f32
    %340 = vector.broadcast %cst_126 : f32 to vector<16x1xf32>
    %341 = arith.addf %337, %340 : vector<16x1xf32>
    %342 = math.rsqrt %341 : vector<16x1xf32>
    %343 = vector.broadcast %342 : vector<16x1xf32> to vector<16x32xf32>
    %344 = arith.mulf %339, %343 : vector<16x32xf32>
    %345 = vector.broadcast %324 : vector<1x32xf32> to vector<16x32xf32>
    %346 = arith.mulf %344, %345 : vector<16x32xf32>
    %347 = vector.broadcast %326 : vector<1x32xf32> to vector<16x32xf32>
    %348 = arith.addf %346, %347 : vector<16x32xf32>
    %349 = arith.truncf %348 : vector<16x32xf32> to vector<16x32xbf16>
    %c1_127 = arith.constant 1 : index
    %c0_128 = arith.constant 0 : index
    %c0_129 = arith.constant 0 : index
    %350 = vector.load %arg7[%c1_127, %c0_128, %c0_129] : memref<2x32x64xbf16, #tpu.memory_space<vmem>>, vector<1x32x64xbf16>
    %351 = vector.shape_cast %350 : vector<1x32x64xbf16> to vector<32x64xbf16>
    %cst_130 = arith.constant dense<0.000000e+00> : vector<16x64xf32>
    %352 = tpu.matmul %349, %351, %cst_130 {dimension_numbers = #tpu.dot_dimension_numbers<[1], [0], [0], [1], [0, 0, 1, 1], [], []>} : vector<16x32xbf16>, vector<32x64xbf16>, vector<16x64xf32> -> vector<16x64xf32>
    %c1_131 = arith.constant 1 : index
    %c0_132 = arith.constant 0 : index
    %c0_133 = arith.constant 0 : index
    %353 = vector.load %arg8[%c1_131, %c0_132, %c0_133] : memref<2x1x64xf32, #tpu.memory_space<vmem>>, vector<1x1x64xf32>
    %354 = vector.shape_cast %353 : vector<1x1x64xf32> to vector<1x64xf32>
    %355 = vector.broadcast %354 : vector<1x64xf32> to vector<16x64xf32>
    %356 = arith.addf %352, %355 : vector<16x64xf32>
    %cst_134 = arith.constant 0.000000e+00 : f32
    %357 = vector.broadcast %cst_134 : f32 to vector<16x64xf32>
    %358 = arith.maximumf %356, %357 : vector<16x64xf32>
    %359 = arith.truncf %358 : vector<16x64xf32> to vector<16x64xbf16>
    %c1_135 = arith.constant 1 : index
    %c0_136 = arith.constant 0 : index
    %c0_137 = arith.constant 0 : index
    %360 = vector.load %arg9[%c1_135, %c0_136, %c0_137] : memref<2x64x32xbf16, #tpu.memory_space<vmem>>, vector<1x64x32xbf16>
    %361 = vector.shape_cast %360 : vector<1x64x32xbf16> to vector<64x32xbf16>
    %cst_138 = arith.constant dense<0.000000e+00> : vector<16x32xf32>
    %362 = tpu.matmul %359, %361, %cst_138 {dimension_numbers = #tpu.dot_dimension_numbers<[1], [0], [0], [1], [0, 0, 1, 1], [], []>} : vector<16x64xbf16>, vector<64x32xbf16>, vector<16x32xf32> -> vector<16x32xf32>
    %c1_139 = arith.constant 1 : index
    %c0_140 = arith.constant 0 : index
    %c0_141 = arith.constant 0 : index
    %363 = vector.load %arg10[%c1_139, %c0_140, %c0_141] : memref<2x1x32xf32, #tpu.memory_space<vmem>>, vector<1x1x32xf32>
    %364 = vector.shape_cast %363 : vector<1x1x32xf32> to vector<1x32xf32>
    %365 = vector.broadcast %364 : vector<1x32xf32> to vector<16x32xf32>
    %366 = arith.addf %362, %365 : vector<16x32xf32>
    %367 = arith.addf %348, %366 : vector<16x32xf32>
    %c1_142 = arith.constant 1 : index
    %c0_143 = arith.constant 0 : index
    %c0_144 = arith.constant 0 : index
    %368 = vector.load %arg13[%c1_142, %c0_143, %c0_144] : memref<2x1x32xf32, #tpu.memory_space<vmem>>, vector<1x1x32xf32>
    %369 = vector.shape_cast %368 : vector<1x1x32xf32> to vector<1x32xf32>
    %c1_145 = arith.constant 1 : index
    %c0_146 = arith.constant 0 : index
    %c0_147 = arith.constant 0 : index
    %370 = vector.load %arg14[%c1_145, %c0_146, %c0_147] : memref<2x1x32xf32, #tpu.memory_space<vmem>>, vector<1x1x32xf32>
    %371 = vector.shape_cast %370 : vector<1x1x32xf32> to vector<1x32xf32>
    %cst_148 = arith.constant dense<0.000000e+00> : vector<16xf32>
    %372 = vector.multi_reduction <add>, %367, %cst_148 [1] : vector<16x32xf32> to vector<16xf32>
    %373 = vector.shape_cast %372 : vector<16xf32> to vector<16x1xf32>
    %cst_149 = arith.constant 3.200000e+01 : f32
    %374 = vector.broadcast %cst_149 : f32 to vector<16x1xf32>
    %375 = arith.divf %373, %374 : vector<16x1xf32>
    %376 = vector.broadcast %375 : vector<16x1xf32> to vector<16x32xf32>
    %377 = arith.subf %367, %376 : vector<16x32xf32>
    %378 = arith.mulf %377, %377 : vector<16x32xf32>
    %cst_150 = arith.constant dense<0.000000e+00> : vector<16xf32>
    %379 = vector.multi_reduction <add>, %378, %cst_150 [1] : vector<16x32xf32> to vector<16xf32>
    %380 = vector.shape_cast %379 : vector<16xf32> to vector<16x1xf32>
    %cst_151 = arith.constant 3.200000e+01 : f32
    %381 = vector.broadcast %cst_151 : f32 to vector<16x1xf32>
    %382 = arith.divf %380, %381 : vector<16x1xf32>
    %383 = vector.broadcast %375 : vector<16x1xf32> to vector<16x32xf32>
    %384 = arith.subf %367, %383 : vector<16x32xf32>
    %cst_152 = arith.constant 9.99999974E-6 : f32
    %385 = vector.broadcast %cst_152 : f32 to vector<16x1xf32>
    %386 = arith.addf %382, %385 : vector<16x1xf32>
    %387 = math.rsqrt %386 : vector<16x1xf32>
    %388 = vector.broadcast %387 : vector<16x1xf32> to vector<16x32xf32>
    %389 = arith.mulf %384, %388 : vector<16x32xf32>
    %390 = vector.broadcast %369 : vector<1x32xf32> to vector<16x32xf32>
    %391 = arith.mulf %389, %390 : vector<16x32xf32>
    %392 = vector.broadcast %371 : vector<1x32xf32> to vector<16x32xf32>
    %393 = arith.addf %391, %392 : vector<16x32xf32>
    %c0_153 = arith.constant 0 : index
    %c0_154 = arith.constant 0 : index
    %394 = vector.load %arg15[%c0_153, %c0_154] : memref<16x32xf32, #tpu.memory_space<vmem>>, vector<16x32xf32>
    tpu.vector_store %arg15[%c0_153, %c0_154], %393 {strides = array<i32>} : memref<16x32xf32, #tpu.memory_space<vmem>>, vector<16x32xf32>,
    return
  }
  func.func @transform_0(%arg0: i32) -> (i32, i32) {
    %c0_i32 = arith.constant 0 : i32
    %c0_i32_0 = arith.constant 0 : i32
    %c0_i32_1 = arith.constant 0 : i32
    return %c0_i32, %c0_i32_0 : i32, i32
  }
  func.func @transform_1(%arg0: i32) -> (i32, i32) {
    %c0_i32 = arith.constant 0 : i32
    %c0_i32_0 = arith.constant 0 : i32
    %c0_i32_1 = arith.constant 0 : i32
    return %c0_i32, %c0_i32_0 : i32, i32
  }
  func.func @transform_2(%arg0: i32) -> (i32, i32, i32) {
    %c0_i32 = arith.constant 0 : i32
    %c0_i32_0 = arith.constant 0 : i32
    %c0_i32_1 = arith.constant 0 : i32
    %c0_i32_2 = arith.constant 0 : i32
    return %c0_i32, %c0_i32_0, %c0_i32_1 : i32, i32, i32
  }
  func.func @transform_3(%arg0: i32) -> (i32, i32, i32) {
    %c0_i32 = arith.constant 0 : i32
    %c0_i32_0 = arith.constant 0 : i32
    %c0_i32_1 = arith.constant 0 : i32
    %c0_i32_2 = arith.constant 0 : i32
    return %c0_i32, %c0_i32_0, %c0_i32_1 : i32, i32, i32
  }
  func.func @transform_4(%arg0: i32) -> (i32, i32, i32) {
    %c0_i32 = arith.constant 0 : i32
    %c0_i32_0 = arith.constant 0 : i32
    %c0_i32_1 = arith.constant 0 : i32
    %c0_i32_2 = arith.constant 0 : i32
    return %c0_i32, %c0_i32_0, %c0_i32_1 : i32, i32, i32
  }
  func.func @transform_5(%arg0: i32) -> (i32, i32, i32) {
    %c0_i32 = arith.constant 0 : i32
    %c0_i32_0 = arith.constant 0 : i32
    %c0_i32_1 = arith.constant 0 : i32
    %c0_i32_2 = arith.constant 0 : i32
    return %c0_i32, %c0_i32_0, %c0_i32_1 : i32, i32, i32
  }
  func.func @transform_6(%arg0: i32) -> (i32, i32, i32) {
    %c0_i32 = arith.constant 0 : i32
    %c0_i32_0 = arith.constant 0 : i32
    %c0_i32_1 = arith.constant 0 : i32
    %c0_i32_2 = arith.constant 0 : i32
    return %c0_i32, %c0_i32_0, %c0_i32_1 : i32, i32, i32
  }
  func.func @transform_7(%arg0: i32) -> (i32, i32, i32) {
    %c0_i32 = arith.constant 0 : i32
    %c0_i32_0 = arith.constant 0 : i32
    %c0_i32_1 = arith.constant 0 : i32
    %c0_i32_2 = arith.constant 0 : i32
    return %c0_i32, %c0_i32_0, %c0_i32_1 : i32, i32, i32
  }
  func.func @transform_8(%arg0: i32) -> (i32, i32, i32) {
    %c0_i32 = arith.constant 0 : i32
    %c0_i32_0 = arith.constant 0 : i32
    %c0_i32_1 = arith.constant 0 : i32
    %c0_i32_2 = arith.constant 0 : i32
    return %c0_i32, %c0_i32_0, %c0_i32_1 : i32, i32, i32
  }
  func.func @transform_9(%arg0: i32) -> (i32, i32, i32) {
    %c0_i32 = arith.constant 0 : i32
    %c0_i32_0 = arith.constant 0 : i32
    %c0_i32_1 = arith.constant 0 : i32
    %c0_i32_2 = arith.constant 0 : i32
    return %c0_i32, %c0_i32_0, %c0_i32_1 : i32, i32, i32
  }
  func.func @transform_10(%arg0: i32) -> (i32, i32, i32) {
    %c0_i32 = arith.constant 0 : i32
    %c0_i32_0 = arith.constant 0 : i32
    %c0_i32_1 = arith.constant 0 : i32
    %c0_i32_2 = arith.constant 0 : i32
    return %c0_i32, %c0_i32_0, %c0_i32_1 : i32, i32, i32
  }
  func.func @transform_11(%arg0: i32) -> (i32, i32, i32) {
    %c0_i32 = arith.constant 0 : i32
    %c0_i32_0 = arith.constant 0 : i32
    %c0_i32_1 = arith.constant 0 : i32
    %c0_i32_2 = arith.constant 0 : i32
    return %c0_i32, %c0_i32_0, %c0_i32_1 : i32, i32, i32
  }
  func.func @transform_12(%arg0: i32) -> (i32, i32, i32) {
    %c0_i32 = arith.constant 0 : i32
    %c0_i32_0 = arith.constant 0 : i32
    %c0_i32_1 = arith.constant 0 : i32
    %c0_i32_2 = arith.constant 0 : i32
    return %c0_i32, %c0_i32_0, %c0_i32_1 : i32, i32, i32
  }
  func.func @transform_13(%arg0: i32) -> (i32, i32, i32) {
    %c0_i32 = arith.constant 0 : i32
    %c0_i32_0 = arith.constant 0 : i32
    %c0_i32_1 = arith.constant 0 : i32
    %c0_i32_2 = arith.constant 0 : i32
    return %c0_i32, %c0_i32_0, %c0_i32_1 : i32, i32, i32
  }
  func.func @transform_14(%arg0: i32) -> (i32, i32) {
    %c0_i32 = arith.constant 0 : i32
    %c0_i32_0 = arith.constant 0 : i32
    %c0_i32_1 = arith.constant 0 : i32
    return %c0_i32, %c0_i32_0 : i32, i32
  }
}

</mosaic_0001>

<bundles_post_ra>
// kernel: tpu_custom_call.1
= control target key start
LH: loop header
LB: loop body
LE: loop exit
PB: predicated region body
PF: predicated region fallthrough
CT: control target
= control target key end

     0   :  { %19 = vsyncpa [#allocation3], 0  ;;  %s3029_s0 = inlined_call_operand.hbm [shape: f32[16,32], index: 0, kind: input, shape index: {}]   ;;  %s3030_s1 = inlined_call_operand.hbm [shape: f32[16,32], index: 1, kind: input, shape index: {}]   ;;  %s3031_s2 = inlined_call_operand.vmem [shape: bf16[2,32,96], index: 2, kind: input, shape index: {}]   ;;  %s3032_s3 = inlined_call_operand.vmem [shape: f32[2,1,96], index: 3, kind: input, shape index: {}]   ;;  %s3033_s4 = inlined_call_operand.vmem [shape: bf16[2,32,32], index: 4, kind: input, shape index: {}]   ;;  %s3034_s5 = inlined_call_operand.vmem [shape: f32[2,1,32], index: 5, kind: input, shape index: {}]   ;;  %s3035_s6 = inlined_call_operand.vmem [shape: bf16[2,32,64], index: 6, kind: input, shape index: {}]   ;;  %s3036_s7 = inlined_call_operand.vmem [shape: f32[2,1,64], index: 7, kind: input, shape index: {}]   ;;  %s3037_s8 = inlined_call_operand.vmem [shape: bf16[2,64,32], index: 8, kind: input, shape index: {}]   ;;  %s3038_s9 = inlined_call_operand.vmem [shape: f32[2,1,32], index: 9, kind: input, shape index: {}]   ;;  %s3039_s10 = inlined_call_operand.vmem [shape: f32[2,1,32], index: 10, kind: input, shape index: {}]   ;;  %s3040_s11 = inlined_call_operand.vmem [shape: f32[2,1,32], index: 11, kind: input, shape index: {}]   ;;  %s3041_s12 = inlined_call_operand.vmem [shape: f32[2,1,32], index: 12, kind: input, shape index: {}]   ;;  %s3042_s13 = inlined_call_operand.vmem [shape: f32[2,1,32], index: 13, kind: input, shape index: {}]   ;;  %s3043_s14 = inlined_call_operand.hbm [shape: f32[16,32], index: 14, kind: output, shape index: {}]  }
   0x1   :  { %20 = vsyncpa [#allocation6], 0 }
   0x2   :  { %21 = vsyncpa [#allocation4], 0  ;;  %s2506_s29 = smov [#allocation2]  }
   0x3   :  { %s27_s30 = sshll.u32 %s2506_s29, 4  ;;  %s28_s30 = int_to_ptr.vmem [resolvable:$true] %s27_s30 }
   0x4   :  { %s2448_s15 = scalar_lea.vmem %s28_s30, 256  ;;  %p2453_p1 = scmp.lt.s32.totalorder %s28_s30, %s28_s30 }
   0x5   :  { %p2449_p0 = scmp.ne.s32.totalorder %s28_s30, %s2448_s15  ;;  %p2454_p2 = scmp.lt.s32.totalorder %s2448_s15, %s2448_s15 }
   0x7   :  { %p2455_p3 = por %p2454_p2, %p2453_p1 }
   0x9   :  { %p2456_p4 = pnand %p2455_p3, %p2449_p0 }
   0xb   :  { %2459 = shalt.err (!%p2456_p4)
}
   0xc   :  { %s3044_s16 = smov 128   ;;  %s3047_s17 = smov 8  }
   0xd   :  { %33 = dma.hbm_to_vmem [thread:$0]  %s3029_s0, 256, %s28_s30, [#allocation3], %s3044_s16, %s3044_s16, %s3047_s17  }
   0xe   :  { %s2509_s20 = smov [#allocation5]  }
   0xf   :  { %s39_s21 = sshll.u32 %s2509_s20, 4  ;;  %s40_s21 = int_to_ptr.vmem [resolvable:$true] %s39_s21 }
  0x10   :  { %s2468_s22 = scalar_lea.vmem %s40_s21, 256  ;;  %p2473_p6 = scmp.lt.s32.totalorder %s40_s21, %s40_s21 }
  0x11   :  { %p2469_p5 = scmp.ne.s32.totalorder %s40_s21, %s2468_s22  ;;  %p2474_p7 = scmp.lt.s32.totalorder %s2468_s22, %s2468_s22 }
  0x13   :  { %p2475_p8 = por %p2474_p7, %p2473_p6 }
  0x15   :  { %p2476_p9 = pnand %p2475_p8, %p2469_p5 }
  0x17   :  { %2479 = shalt.err (!%p2476_p9)
}
  0x18   :  { %45 = dma.hbm_to_vmem [thread:$0]  %s3030_s1, 256, %s40_s21, [#allocation6], %s3044_s16, %s3044_s16, %s3047_s17  }
  0x19   :  { %2500 = dma.done.wait [#allocation3], 256  }
  0x1a   :  { %2501 = vsyncadd [#allocation3], 4294967040 }
  0x1b   :  { %2502 = dma.done.wait [#allocation6], 256  }
  0x1c   :  { %2503 = vsyncadd [#allocation6], 4294967040  ;;  %v2510_v0 = vmov 0.0   ;;  %vm2511_vm0 = vmmov 0   ;;  %v2340_v1 = vld [vmem:[%s3031_s2 + $0x8] sm:$0xff]   ;;  %v2341_v2 = vld [vmem:[%s3031_s2] sm:$0xff]   ;;  %v85_v31 = vlaneseq }
  0x1d   :  { %2122 = vmatprep.subr.bf16.mxu1 %v2510_v0  ;;  %2126 = vmatprep.mubr.msk.bf16.mxu1 %vm2511_vm0, %v2510_v0  ;;  %v77_v3 = vld [vmem:[#allocation2] sm:$0xff]  ;;  %v78_v4 = vld [vmem:[#allocation2 + $0x8] sm:$0xff]  ;;  %v81_v5 = vld [vmem:[#allocation5] sm:$0xff]  ;;  %vm152_vm1 = vcmask 261120   ;;  %s2512_s29 = smov 120   ;;  %s2513_s30 = smov 96  }
  0x1e   :  { %2136 = vmatprep.subr.bf16.mxu0 %v2510_v0  ;;  %2138 = vmatprep.mubr.msk.bf16.mxu0 %vm2511_vm0, %v2510_v0  ;;  %v79_v6 = vmul.f32 5.656854, %v77_v3  ;;  %v80_v7 = vmul.f32 5.656854, %v78_v4  ;;  %v82_v8 = vld [vmem:[#allocation5 + $0x8] sm:$0xff]  ;;  %s2514_s15 = smov 80  }
  0x1f   :  { %2123 = vmatpush3.bf16.msra.mxu1 %v2340_v1  ;;  %v1974_v13 = vld [vmem:[%s3032_s3] ss:$0 sm:$0xff]  ;;  %s2515_s18 = smov 88   ;;  %s2516_s19 = smov 72   ;;  %vm201_vm2 = vcmask 64512   ;;  %v86_v32 = vshrl.u32 %v85_v31, 7 }
  0x20   :  { %2124 = vmatprep.subr.bf16.mxu1 %v2510_v0  ;;  %v2626_v9 = vadd.f32 %v81_v5, %v79_v6  ;;  %v2628_v10 = vadd.f32 %v82_v8, %v80_v7  ;;  %s2517_s20 = smov 112   ;;  %s2518_s21 = smov 104   ;;  %v113_v33 = vand.u32 127, %v85_v31  ;;  %vm251_vm4 = vcmask 130048  }
  0x21   :  { %v92_v34 = vand.u32 1, %v86_v32  ;;  %v87_v36 = vadd.s32 8, %v86_v32  ;;  %s2519_s22 = smov 56   ;;  %s2520_s23 = smov 64   ;;  %vm719_vm6 = vcmask 195584   ;;  %vm947_vm7 = vcmask 523264  }
  0x22   :  { %v128_v11 = vpack.c.bf16 %v2628_v10, %v2626_v9  ;;  %v118_v35 = vand.u32 1, %v113_v33  ;;  %s2521_s24 = smov 48   ;;  %s2522_s0 = smov 40  }
  0x23   :  { %2125 = vmatpush3.bf16.msra.mxu1 %v2341_v2  ;;  %v99_v38 = vand.u32 1, %v87_v36  ;;  %s3046_s28 = smov 16   ;;  %s3045_s25 = smov 24  }
  0x24   :  { %2130 = vmatprep.subr.bf16.mxu1 %v2510_v0  ;;  %vm2676_vm3 = vcmp.eq.s32.totalorder %v92_v34, %v118_v35 }
  0x25   :  { %vm2683_vm5 = vcmp.eq.s32.totalorder %v99_v38, %v118_v35 }
  0x26   :  { %2127 = vmatmul.mubr.msk.bf16.vlgmr.msra.gmra.mxu1 %vm152_vm1, %v128_v11 }
  0x27   :  { %2132 = vmatprep.mubr.msk.bf16.mxu1 %vm2511_vm0, %v2510_v0 }
  0xe6   :  { %v190_v12 = vpop.f32.mrf.mxu1 }
  0xe7   :  { %v191_v16 = vadd.f32 %v1974_v13, %v190_v12 }
  0xe8   :  { %v2128_v14 = vpop.f32.mrf.mxu1 }
  0xea   :  { %v193_v15 = vpop.f32.mrf.mxu1 }
  0xeb   :  { %v194_v17 = vadd.f32 %v1974_v13, %v193_v15 }
  0xec   :  { %v2129_v18 = vpop.f32.mrf.mxu1 }
  0xed   :  { %v2639_v19 = vpack.c.bf16 %v194_v17, %v191_v16 }
  0xef   :  { %322 = vrot.lane.b32.xlu1 %v2639_v19, %s2512_s29  ;;  %199 = vrot.lane.b32.xlu0 %v2639_v19, %s2513_s30 }
  0xf3   :  { %447 = vrot.lane.b32.xlu1 %v2639_v19, %s2514_s15  ;;  %324 = vrot.lane.b32.xlu0 %v2639_v19, %s2515_s18 }
  0xf7   :  { %570 = vrot.lane.b32.xlu1 %v2639_v19, %s2516_s19  ;;  %445 = vrot.lane.b32.xlu0 %v2639_v19, %s2517_s20 }
  0xfb   :  { %568 = vrot.lane.b32.xlu0 %v2639_v19, %s2518_s21 }
 0x161   :  { %v200_v20 = vpop.permute.xlu0 %199  ;;  %v323_v23 = vpop.permute.xlu1 %322 }
 0x162   :  { %v206_v21 = vsel %vm201_vm2, %v200_v20, 0 }
 0x163   :  { %2131 = vmatpush3.bf16.xpose.msra.mxu1 %v206_v21 }
 0x164   :  { %2142 = vmatprep.subr.bf16.mxu1 %v2510_v0 }
 0x165   :  { %v325_v22 = vpop.permute.xlu0 %324  ;;  %v448_v25 = vpop.permute.xlu1 %447 }
 0x166   :  { %v330_v24 = vsel %vm201_vm2, %v325_v22, 0  ;;  %v453_v26 = vsel %vm201_vm2, %v448_v25, 0 }
 0x169   :  { %v571_v27 = vpop.permute.xlu1 %570  ;;  %v446_v28 = vpop.permute.xlu0 %445 }
 0x16a   :  { %2133 = vmatmul.mubr.msk.bf16.vlgmr.msra.gmra.mxu1 %vm201_vm2, %v2639_v19  ;;  %v576_v29 = vsel %vm201_vm2, %v571_v27, 0 }
 0x16b   :  { %2143 = vmatpush3.bf16.xpose.msra.mxu1 %v330_v24  ;;  %2144 = vmatprep.mubr.msk.bf16.mxu1 %vm2511_vm0, %v2510_v0 }
 0x16c   :  { %2154 = vmatprep.subr.bf16.mxu1 %v2510_v0 }
 0x16d   :  { %v569_v30 = vpop.permute.xlu0 %568 }
 0x172   :  { %2145 = vmatmul.mubr.msk.bf16.vlgmr.msra.gmra.mxu1 %vm201_vm2, %v323_v23 }
 0x173   :  { %2155 = vmatpush3.bf16.xpose.msra.mxu1 %v453_v26  ;;  %2156 = vmatprep.mubr.msk.bf16.mxu1 %vm2511_vm0, %v2510_v0 }
 0x174   :  { %2166 = vmatprep.subr.bf16.mxu1 %v2510_v0 }
 0x17a   :  { %2157 = vmatmul.mubr.msk.bf16.vlgmr.msra.gmra.mxu1 %vm201_vm2, %v446_v28 }
 0x17b   :  { %2167 = vmatpush3.bf16.xpose.msra.mxu1 %v576_v29  ;;  %2168 = vmatprep.mubr.msk.bf16.mxu1 %vm2511_vm0, %v2510_v0 }
 0x17c   :  { %2178 = vmatprep.subr.bf16.mxu1 %v2510_v0 }
 0x182   :  { %2169 = vmatmul.mubr.msk.bf16.vlgmr.msra.gmra.mxu1 %vm201_vm2, %v569_v30 }
 0x183   :  { %2182 = vmatprep.mubr.msk.bf16.mxu1 %vm2511_vm0, %v2510_v0 }
 0x22a   :  { %v242_v39 = vpop.f32.mrf.mxu1 }
 0x22b   :  { %v249_v40 = vsel %vm2676_vm3, %v242_v39, -1e+30 }
 0x22c   :  { %v2134_v41 = vpop.f32.mrf.mxu1  ;;  %v252_v42 = vsel %vm251_vm4, %v249_v40, -inf }
 0x22d   :  { %253 = vmax.xlane.f32.xlu1 %v252_v42 }
 0x22e   :  { %v245_v44 = vpop.f32.mrf.mxu1 }
 0x22f   :  { %v250_v45 = vsel %vm2683_vm5, %v245_v44, -1e+30 }
 0x230   :  { %v2135_v46 = vpop.f32.mrf.mxu1  ;;  %v255_v47 = vsel %vm251_vm4, %v250_v45, -inf }
 0x231   :  { %256 = vmax.xlane.f32.xlu0 %v255_v47 }
 0x232   :  { %v366_v48 = vpop.f32.mrf.mxu1 }
 0x233   :  { %v373_v49 = vsel %vm2676_vm3, %v366_v48, -1e+30 }
 0x234   :  { %v2146_v50 = vpop.f32.mrf.mxu1  ;;  %v375_v51 = vsel %vm251_vm4, %v373_v49, -inf }
 0x235   :  { %376 = vmax.xlane.f32.xlu0 %v375_v51 }
 0x236   :  { %v369_v52 = vpop.f32.mrf.mxu1 }
 0x237   :  { %v374_v53 = vsel %vm2683_vm5, %v369_v52, -1e+30 }
 0x238   :  { %v2147_v54 = vpop.f32.mrf.mxu1  ;;  %v378_v55 = vsel %vm251_vm4, %v374_v53, -inf }
 0x239   :  { %379 = vmax.xlane.f32.xlu1 %v378_v55 }
 0x23a   :  { %v489_v56 = vpop.f32.mrf.mxu1 }
 0x23b   :  { %v496_v57 = vsel %vm2676_vm3, %v489_v56, -1e+30 }
 0x23c   :  { %v2158_v58 = vpop.f32.mrf.mxu1  ;;  %v498_v59 = vsel %vm251_vm4, %v496_v57, -inf }
 0x23d   :  { %499 = vmax.xlane.f32.xlu0 %v498_v59 }
 0x23e   :  { %v492_v60 = vpop.f32.mrf.mxu1 }
 0x23f   :  { %v497_v61 = vsel %vm2683_vm5, %v492_v60, -1e+30 }
 0x240   :  { %v2159_v62 = vpop.f32.mrf.mxu1  ;;  %v501_v63 = vsel %vm251_vm4, %v497_v61, -inf }
 0x241   :  { %502 = vmax.xlane.f32.xlu1 %v501_v63 }
 0x242   :  { %v612_v1 = vpop.f32.mrf.mxu1 }
 0x243   :  { %v619_v2 = vsel %vm2676_vm3, %v612_v1, -1e+30 }
 0x244   :  { %v2170_v3 = vpop.f32.mrf.mxu1  ;;  %v621_v4 = vsel %vm251_vm4, %v619_v2, -inf }
 0x245   :  { %622 = vmax.xlane.f32.xlu0 %v621_v4 }
 0x246   :  { %v615_v5 = vpop.f32.mrf.mxu1 }
 0x247   :  { %v620_v6 = vsel %vm2683_vm5, %v615_v5, -1e+30 }
 0x248   :  { %v2171_v7 = vpop.f32.mrf.mxu1  ;;  %v624_v8 = vsel %vm251_vm4, %v620_v6, -inf }
 0x249   :  { %625 = vmax.xlane.f32.xlu1 %v624_v8 }
 0x2b6   :  { %v254_v11 = vpop.xlane.xlu1 %253 }
 0x2b7   :  { %v258_v12 = vsub.f32 %v249_v40, %v254_v11 }
 0x2b9   :  { %v260_v13 = vmul.f32 1.442695, %v258_v12 }
 0x2ba   :  { %v257_v14 = vpop.xlane.xlu0 %256 }
 0x2bb   :  { %2360 = vpow2.f32 %v260_v13  ;;  %v259_v15 = vsub.f32 %v250_v45, %v257_v14 }
 0x2bd   :  { %v262_v16 = vmul.f32 1.442695, %v259_v15 }
 0x2be   :  { %v377_v17 = vpop.xlane.xlu0 %376 }
 0x2bf   :  { %2362 = vpow2.f32 %v262_v16  ;;  %v381_v18 = vsub.f32 %v373_v49, %v377_v17 }
 0x2c1   :  { %v383_v20 = vmul.f32 1.442695, %v381_v18 }
 0x2c2   :  { %v380_v27 = vpop.xlane.xlu1 %379 }
 0x2c3   :  { %2364 = vpow2.f32 %v383_v20  ;;  %v382_v28 = vsub.f32 %v374_v53, %v380_v27 }
 0x2c5   :  { %v385_v32 = vmul.f32 1.442695, %v382_v28 }
 0x2c6   :  { %v500_v29 = vpop.xlane.xlu0 %499 }
 0x2c7   :  { %v504_v31 = vsub.f32 %v496_v57, %v500_v29  ;;  %2366 = vpow2.f32 %v385_v32  ;;  %v2342_v32 = vld [vmem:[%s3033_s4 + $0x8] sm:$0xff]  }
 0x2c8   :  { %v2361_v21 = vpop.eup %2360  ;;  %2179 = vmatpush3.bf16.msra.mxu1 %v2342_v32 }
 0x2c9   :  { %v264_v22 = vsel %vm251_vm4, %v2361_v21, 0.0  ;;  %v506_v36 = vmul.f32 1.442695, %v504_v31  ;;  %2180 = vmatprep.subr.bf16.mxu1 %v2510_v0 }
 0x2ca   :  { %265 = vadd.xlane.f32.xlu0 %v264_v22  ;;  %v503_v30 = vpop.xlane.xlu1 %502 }
 0x2cb   :  { %v505_v33 = vsub.f32 %v497_v61, %v503_v30  ;;  %2368 = vpow2.f32 %v506_v36 }
 0x2cc   :  { %v2363_v23 = vpop.eup %2362 }
 0x2cd   :  { %v267_v24 = vsel %vm251_vm4, %v2363_v23, 0.0  ;;  %v508_v39 = vmul.f32 1.442695, %v505_v33 }
 0x2ce   :  { %268 = vadd.xlane.f32.xlu1 %v267_v24  ;;  %v623_v34 = vpop.xlane.xlu0 %622 }
 0x2cf   :  { %v627_v38 = vsub.f32 %v619_v2, %v623_v34  ;;  %2370 = vpow2.f32 %v508_v39 }
 0x2d0   :  { %v2710_v25 = vpop.eup %2364 }
 0x2d1   :  { %v387_v26 = vsel %vm251_vm4, %v2710_v25, 0.0  ;;  %v629_v41 = vmul.f32 1.442695, %v627_v38  ;;  %v2343_v38 = vld [vmem:[%s3033_s4] sm:$0xff]  }
 0x2d2   :  { %388 = vadd.xlane.f32.xlu0 %v387_v26  ;;  %v626_v35 = vpop.xlane.xlu1 %625  ;;  %2181 = vmatpush3.bf16.msra.mxu1 %v2343_v38  ;;  %v1991_v38 = vld [vmem:[%s3040_s11] ss:$0 sm:$0xff] }
 0x2d3   :  { %v628_v40 = vsub.f32 %v620_v6, %v626_v35  ;;  %2372 = vpow2.f32 %v629_v41  ;;  %2194 = vmatprep.subr.bf16.mxu1 %v2510_v0 }
 0x2d4   :  { %v2367_v44 = vpop.eup %2366 }
 0x2d5   :  { %v631_v42 = vmul.f32 1.442695, %v628_v40  ;;  %v390_v46 = vsel %vm251_vm4, %v2367_v44, 0.0 }
 0x2d7   :  { %2374 = vpow2.f32 %v631_v42 }
 0x2d8   :  { %v2369_v45 = vpop.eup %2368 }
 0x2d9   :  { %v510_v49 = vsel %vm251_vm4, %v2369_v45, 0.0 }
 0x2dc   :  { %v2371_v47 = vpop.eup %2370 }
 0x2dd   :  { %v513_v50 = vsel %vm251_vm4, %v2371_v47, 0.0 }
 0x2df   :  { %398 = vrot.lane.b32.xlu1 %v2639_v19, %s2519_s22 }
 0x2e0   :  { %v2719_v48 = vpop.eup %2372 }
 0x2e1   :  { %v633_v52 = vsel %vm251_vm4, %v2719_v48, 0.0 }
 0x2e4   :  { %v2375_v51 = vpop.eup %2374 }
 0x2e5   :  { %v636_v53 = vsel %vm251_vm4, %v2375_v51, 0.0 }
 0x2e8   :  { %275 = vrot.lane.b32.xlu0 %v2639_v19, %s2520_s23 }
 0x303   :  { %391 = vadd.xlane.f32.xlu1 %v390_v46 }
 0x307   :  { %511 = vadd.xlane.f32.xlu0 %v510_v49  ;;  %514 = vadd.xlane.f32.xlu1 %v513_v50 }
 0x30b   :  { %634 = vadd.xlane.f32.xlu0 %v633_v52  ;;  %637 = vadd.xlane.f32.xlu1 %v636_v53 }
 0x31c   :  { %521 = vrot.lane.b32.xlu1 %v2639_v19, %s2521_s24 }
 0x321   :  { %644 = vrot.lane.b32.xlu0 %v2639_v19, %s2522_s0 }
 0x353   :  { %v266_v54 = vpop.xlane.xlu0 %265 }
 0x354   :  { %2376 = vrcp.f32 %v266_v54 }
 0x357   :  { %v269_v55 = vpop.xlane.xlu1 %268 }
 0x358   :  { %2378 = vrcp.f32 %v269_v55 }
 0x35b   :  { %v389_v56 = vpop.xlane.xlu0 %388  ;;  %v399_v63 = vpop.permute.xlu1 %398 }
 0x35c   :  { %2380 = vrcp.f32 %v389_v56 }
 0x35f   :  { %v276_v57 = vpop.permute.xlu0 %275 }
 0x360   :  { %2137 = vmatpush3.bf16.msra.mxu0 %v276_v57 }
 0x361   :  { %2148 = vmatprep.subr.bf16.mxu0 %v2510_v0  ;;  %v2377_v58 = vpop.eup %2376 }
 0x362   :  { %v272_v60 = vmul.f32 %v2377_v58, %v2361_v21 }
 0x365   :  { %v2379_v59 = vpop.eup %2378 }
 0x366   :  { %v273_v61 = vmul.f32 %v2379_v59, %v2363_v23 }
 0x368   :  { %v274_v62 = vpack.c.bf16 %v273_v61, %v272_v60 }
 0x369   :  { %v2381_v5 = vpop.eup %2380 }
 0x36a   :  { %2139 = vmatmul.mubr.msk.bf16.vlgmr.msra.gmra.mxu0 %vm251_vm4, %v274_v62  ;;  %v395_v7 = vmul.f32 %v2381_v5, %v2710_v25 }
 0x36b   :  { %2149 = vmatpush3.bf16.msra.mxu0 %v399_v63  ;;  %2150 = vmatprep.mubr.msk.bf16.mxu0 %vm2511_vm0, %v2510_v0 }
 0x36c   :  { %2160 = vmatprep.subr.bf16.mxu0 %v2510_v0 }
 0x38c   :  { %v392_v19 = vpop.xlane.xlu1 %391 }
 0x38d   :  { %2382 = vrcp.f32 %v392_v19  ;;  %v1986_v19 = vld [vmem:[%s3034_s5] ss:$0 sm:$0xff] }
 0x390   :  { %v512_v1 = vpop.xlane.xlu0 %511  ;;  %v515_v2 = vpop.xlane.xlu1 %514 }
 0x391   :  { %2384 = vrcp.f32 %v512_v1 }
 0x392   :  { %2386 = vrcp.f32 %v515_v2 }
 0x394   :  { %v635_v3 = vpop.xlane.xlu0 %634  ;;  %v638_v4 = vpop.xlane.xlu1 %637 }
 0x395   :  { %2388 = vrcp.f32 %v635_v3 }
 0x396   :  { %2390 = vrcp.f32 %v638_v4 }
 0x398   :  { %v522_v14 = vpop.permute.xlu1 %521  ;;  %v645_v21 = vpop.permute.xlu0 %644 }
 0x39a   :  { %v2383_v6 = vpop.eup %2382 }
 0x39b   :  { %v396_v8 = vmul.f32 %v2383_v6, %v2367_v44 }
 0x39d   :  { %v397_v11 = vpack.c.bf16 %v396_v8, %v395_v7 }
 0x39e   :  { %v2385_v12 = vpop.eup %2384 }
 0x39f   :  { %v2387_v13 = vpop.eup %2386  ;;  %2151 = vmatmul.mubr.msk.bf16.vlgmr.msra.gmra.mxu0 %vm251_vm4, %v397_v11  ;;  %v518_v15 = vmul.f32 %v2385_v12, %v2369_v45 }
 0x3a0   :  { %2161 = vmatpush3.bf16.msra.mxu0 %v522_v14  ;;  %2162 = vmatprep.mubr.msk.bf16.mxu0 %vm2511_vm0, %v2510_v0  ;;  %v519_v16 = vmul.f32 %v2387_v13, %v2371_v47 }
 0x3a1   :  { %2172 = vmatprep.subr.bf16.mxu0 %v2510_v0 }
 0x3a2   :  { %v2389_v17 = vpop.eup %2388  ;;  %v520_v18 = vpack.c.bf16 %v519_v16, %v518_v15 }
 0x3a3   :  { %v2391_v20 = vpop.eup %2390  ;;  %v641_v22 = vmul.f32 %v2389_v17, %v2719_v48 }
 0x3a4   :  { %v642_v23 = vmul.f32 %v2391_v20, %v2375_v51 }
 0x3a6   :  { %v643_v24 = vpack.c.bf16 %v642_v23, %v641_v22  ;;  %v2345_v23 = vld [vmem:[%s3035_s6] sm:$0xff]  }
 0x3a7   :  { %2163 = vmatmul.mubr.msk.bf16.vlgmr.msra.gmra.mxu0 %vm251_vm4, %v520_v18 }
 0x3a8   :  { %2173 = vmatpush3.bf16.msra.mxu0 %v645_v21  ;;  %2174 = vmatprep.mubr.msk.bf16.mxu0 %vm2511_vm0, %v2510_v0 }
 0x3a9   :  { %2186 = vmatprep.subr.bf16.mxu0 %v2510_v0 }
 0x3af   :  { %2175 = vmatmul.mubr.msk.bf16.vlgmr.msra.gmra.mxu0 %vm251_vm4, %v643_v24  ;;  %v2346_v24 = vld [vmem:[%s3037_s8 + $0x18] sm:$0xff]  }
 0x3b0   :  { %2190 = vmatprep.mubr.msk.bf16.mxu0 %vm2511_vm0, %v2510_v0 }
 0x42a   :  { %v315_v25 = vpop.f32.mrf.mxu0 }
 0x42c   :  { %v2140_v26 = vpop.f32.mrf.mxu0 }
 0x42e   :  { %v318_v27 = vpop.f32.mrf.mxu0 }
 0x430   :  { %v2141_v28 = vpop.f32.mrf.mxu0 }
 0x45f   :  { %v438_v29 = vpop.f32.mrf.mxu0 }
 0x461   :  { %v2152_v30 = vpop.f32.mrf.mxu0 }
 0x463   :  { %v441_v31 = vpop.f32.mrf.mxu0 }
 0x464   :  { %v2310_v33 = vpack.i.bf16 %v441_v31, %v438_v29 }
 0x465   :  { %v2153_v34 = vpop.f32.mrf.mxu0 }
 0x466   :  { %2311 = vrot.lane.b32.xlu1 %v2310_v33, %s3047_s17  ;;  %v1990_v33 = vld [vmem:[%s3039_s10] ss:$0 sm:$0xff] }
 0x467   :  { %v561_v35 = vpop.f32.mrf.mxu0 }
 0x469   :  { %v2164_v36 = vpop.f32.mrf.mxu0 }
 0x46b   :  { %v564_v39 = vpop.f32.mrf.mxu0 }
 0x46c   :  { %v2315_v40 = vpack.i.bf16 %v564_v39, %v561_v35 }
 0x46d   :  { %v2165_v41 = vpop.f32.mrf.mxu0 }
 0x46e   :  { %2316 = vrot.lane.b32.xlu0 %v2315_v40, %s3046_s28 }
 0x46f   :  { %v684_v42 = vpop.f32.mrf.mxu0 }
 0x471   :  { %v2176_v44 = vpop.f32.mrf.mxu0 }
 0x472   :  { %v2347_v44 = vld [vmem:[%s3037_s8 + $0x10] sm:$0xff]  }
 0x473   :  { %v687_v45 = vpop.f32.mrf.mxu0 }
 0x474   :  { %v2320_v46 = vpack.i.bf16 %v687_v45, %v684_v42  ;;  %v2348_v45 = vld [vmem:[%s3037_s8 + $0x8] sm:$0xff]  }
 0x475   :  { %v2177_v47 = vpop.f32.mrf.mxu0 }
 0x476   :  { %2321 = vrot.lane.b32.xlu1 %v2320_v46, %s3045_s25  ;;  %v2349_v46 = vld [vmem:[%s3037_s8] sm:$0xff]  }
 0x477   :  { %v1992_v47 = vld [vmem:[%s3036_s7] ss:$0 sm:$0xff] }
 0x4d8   :  { %v2312_v48 = vpop.permute.xlu1 %2311 }
 0x4d9   :  { %v2314_v50 = vunpack.i.h.bf16 %v2312_v48  ;;  %v2313_v51 = vunpack.i.l.bf16 %v2312_v48 }
 0x4db   :  { %v716_v55 = vsel %vm201_vm2, %v318_v27, %v2314_v50  ;;  %v715_v56 = vsel %vm201_vm2, %v315_v25, %v2313_v51 }
 0x4e0   :  { %v2317_v49 = vpop.permute.xlu0 %2316 }
 0x4e1   :  { %v2319_v52 = vunpack.i.h.bf16 %v2317_v49  ;;  %v2318_v53 = vunpack.i.l.bf16 %v2317_v49 }
 0x4e3   :  { %v717_v59 = vsel %vm251_vm4, %v715_v56, %v2318_v53  ;;  %v718_v60 = vsel %vm251_vm4, %v716_v55, %v2319_v52 }
 0x4e8   :  { %v2322_v54 = vpop.permute.xlu1 %2321 }
 0x4e9   :  { %v2324_v57 = vunpack.i.h.bf16 %v2322_v54  ;;  %v2323_v58 = vunpack.i.l.bf16 %v2322_v54 }
 0x4eb   :  { %v720_v61 = vsel %vm719_vm6, %v717_v59, %v2323_v58  ;;  %v721_v62 = vsel %vm719_vm6, %v718_v60, %v2324_v57  ;;  %v1996_v57 = vld [vmem:[%s3038_s9] ss:$0 sm:$0xff] }
 0x4ec   :  { %v722_v63 = vpack.c.bf16 %v721_v62, %v720_v61 }
 0x4ee   :  { %2183 = vmatmul.mubr.msk.bf16.vlgmr.msra.gmra.mxu1 %vm152_vm1, %v722_v63 }
 0x4ef   :  { %2202 = vmatprep.mubr.msk.bf16.mxu1 %vm2511_vm0, %v2510_v0  ;;  %2195 = vmatpush3.bf16.msra.mxu1 %v2346_v24 }
 0x4f0   :  { %2196 = vmatprep.subr.bf16.mxu1 %v2510_v0 }
 0x4f3   :  { %2197 = vmatpush3.bf16.msra.mxu1 %v2347_v44 }
 0x4f4   :  { %2198 = vmatprep.subr.bf16.mxu1 %v2510_v0 }
 0x4f7   :  { %2199 = vmatpush3.bf16.msra.mxu1 %v2348_v45 }
 0x4f8   :  { %2200 = vmatprep.subr.bf16.mxu1 %v2510_v0 }
 0x4fb   :  { %2201 = vmatpush3.bf16.msra.mxu1 %v2349_v46 }
 0x4fc   :  { %2220 = vmatprep.subr.bf16.mxu1 %v2510_v0 }
 0x5ae   :  { %v783_v1 = vpop.f32.mrf.mxu1 }
 0x5af   :  { %v784_v2 = vadd.f32 %v1986_v19, %v783_v1 }
 0x5b0   :  { %v2184_v3 = vpop.f32.mrf.mxu1 }
 0x5b1   :  { %v790_v4 = vadd.f32 %v784_v2, %v2626_v9 }
 0x5b2   :  { %v786_v5 = vpop.f32.mrf.mxu1 }
 0x5b3   :  { %v787_v6 = vadd.f32 %v1986_v19, %v786_v5  ;;  %v794_v7 = vsel %vm152_vm1, %v790_v4, 0.0 }
 0x5b4   :  { %795 = vadd.xlane.f32.xlu0 %v794_v7  ;;  %v2185_v8 = vpop.f32.mrf.mxu1 }
 0x5b5   :  { %v791_v11 = vadd.f32 %v787_v6, %v2628_v10  ;;  %v2344_v10 = vld [vmem:[%s3035_s6 + $0x8] sm:$0xff]  }
 0x5b6   :  { %2187 = vmatpush3.bf16.msra.mxu0 %v2344_v10 }
 0x5b7   :  { %v797_v12 = vsel %vm152_vm1, %v791_v11, 0.0  ;;  %2188 = vmatprep.subr.bf16.mxu0 %v2510_v0 }
 0x5b8   :  { %798 = vadd.xlane.f32.xlu1 %v797_v12 }
 0x5ba   :  { %2189 = vmatpush3.bf16.msra.mxu0 %v2345_v23 }
 0x5bb   :  { %2206 = vmatprep.subr.bf16.mxu0 %v2510_v0 }
 0x63d   :  { %v796_v13 = vpop.xlane.xlu0 %795 }
 0x63e   :  { %v801_v14 = vmul.f32 0.03125, %v796_v13 }
 0x640   :  { %v803_v15 = vsub.f32 %v790_v4, %v801_v14 }
 0x641   :  { %v799_v16 = vpop.xlane.xlu1 %798 }
 0x642   :  { %v802_v17 = vmul.f32 0.03125, %v799_v16  ;;  %v805_v18 = vmul.f32 %v803_v15, %v803_v15  ;;  %v2350_v16 = vld [vmem:[%s3031_s2 + $0x18] sm:$0xff]  }
 0x644   :  { %v804_v20 = vsub.f32 %v791_v11, %v802_v17  ;;  %v807_v9 = vsel %vm152_vm1, %v805_v18, 0.0  ;;  %v2351_v17 = vld [vmem:[%s3031_s2 + $0x10] sm:$0xff]  }
 0x645   :  { %808 = vadd.xlane.f32.xlu0 %v807_v9 }
 0x646   :  { %v806_v21 = vmul.f32 %v804_v20, %v804_v20 }
 0x648   :  { %v810_v22 = vsel %vm152_vm1, %v806_v21, 0.0 }
 0x649   :  { %811 = vadd.xlane.f32.xlu0 %v810_v22 }
 0x6ce   :  { %v809_v25 = vpop.xlane.xlu0 %808 }
 0x6cf   :  { %v813_v26 = vmul.f32 0.03125, %v809_v25  ;;  %v2002_v25 = vld [vmem:[%s3041_s12] ss:$0 sm:$0xff] }
 0x6d1   :  { %v815_v27 = vadd.f32 1e-05, %v813_v26 }
 0x6d2   :  { %v812_v28 = vpop.xlane.xlu0 %811 }
 0x6d3   :  { %2392 = vrsqrt.f32 %v815_v27  ;;  %v814_v29 = vmul.f32 0.03125, %v812_v28 }
 0x6d5   :  { %v816_v30 = vadd.f32 1e-05, %v814_v29  ;;  %v2003_v29 = vld [vmem:[%s3042_s13] ss:$0 sm:$0xff] }
 0x6d7   :  { %2394 = vrsqrt.f32 %v816_v30 }
 0x6e0   :  { %v2393_v31 = vpop.eup %2392 }
 0x6e1   :  { %v819_v32 = vmul.f32 %v2393_v31, %v803_v15 }
 0x6e3   :  { %v827_v36 = vmul.f32 %v1990_v33, %v819_v32 }
 0x6e4   :  { %v2395_v34 = vpop.eup %2394 }
 0x6e5   :  { %v820_v35 = vmul.f32 %v2395_v34, %v804_v20  ;;  %v835_v40 = vadd.f32 %v1991_v38, %v827_v36 }
 0x6e7   :  { %v828_v39 = vmul.f32 %v1990_v33, %v820_v35  ;;  %v2009_v35 = vld [vmem:[%s3032_s3 + $0x1] ss:$0 sm:$0xff] }
 0x6e9   :  { %v836_v41 = vadd.f32 %v1991_v38, %v828_v39 }
 0x6eb   :  { %v837_v42 = vpack.c.bf16 %v836_v41, %v835_v40 }
 0x6ed   :  { %2191 = vmatmul.mubr.msk.bf16.vlgmr.msra.gmra.mxu0 %vm152_vm1, %v837_v42 }
 0x6ee   :  { %2210 = vmatprep.mubr.msk.bf16.mxu0 %vm2511_vm0, %v2510_v0  ;;  %2207 = vmatpush3.bf16.msra.mxu0 %v2350_v16 }
 0x6ef   :  { %2208 = vmatprep.subr.bf16.mxu0 %v2510_v0 }
 0x6f2   :  { %2209 = vmatpush3.bf16.msra.mxu0 %v2351_v17 }
 0x6f3   :  { %2214 = vmatprep.subr.bf16.mxu0 %v2510_v0 }
 0x7ad   :  { %v898_v48 = vpop.f32.mrf.mxu0 }
 0x7ae   :  { %v899_v50 = vadd.f32 %v1992_v47, %v898_v48 }
 0x7af   :  { %v2192_v49 = vpop.f32.mrf.mxu0 }
 0x7b0   :  { %v905_v54 = vmax.f32 %v899_v50, 0.0 }
 0x7b1   :  { %v901_v51 = vpop.f32.mrf.mxu0 }
 0x7b2   :  { %v902_v52 = vadd.f32 %v1992_v47, %v901_v51 }
 0x7b3   :  { %v2193_v53 = vpop.f32.mrf.mxu0 }
 0x7b4   :  { %v906_v55 = vmax.f32 %v902_v52, 0.0 }
 0x7b6   :  { %v907_v56 = vpack.c.bf16 %v906_v55, %v905_v54 }
 0x7b8   :  { %2203 = vmatmul.mubr.msk.bf16.vlgmr.msra.gmra.mxu1 %vm947_vm7, %v907_v56 }
 0x7b9   :  { %2222 = vmatprep.mubr.msk.bf16.mxu1 %vm2511_vm0, %v2510_v0 }
 0x878   :  { %v985_v58 = vpop.f32.mrf.mxu1 }
 0x879   :  { %v986_v59 = vadd.f32 %v1996_v57, %v985_v58 }
 0x87a   :  { %v2204_v60 = vpop.f32.mrf.mxu1 }
 0x87b   :  { %v992_v61 = vadd.f32 %v986_v59, %v835_v40 }
 0x87c   :  { %v988_v62 = vpop.f32.mrf.mxu1 }
 0x87d   :  { %v989_v63 = vadd.f32 %v1996_v57, %v988_v62  ;;  %v996_v19 = vsel %vm152_vm1, %v992_v61, 0.0 }
 0x87e   :  { %997 = vadd.xlane.f32.xlu1 %v996_v19  ;;  %v2205_v1 = vpop.f32.mrf.mxu1 }
 0x87f   :  { %v993_v2 = vadd.f32 %v989_v63, %v836_v41 }
 0x881   :  { %v999_v3 = vsel %vm152_vm1, %v993_v2, 0.0 }
 0x882   :  { %1000 = vadd.xlane.f32.xlu0 %v999_v3 }
 0x907   :  { %v998_v4 = vpop.xlane.xlu1 %997 }
 0x908   :  { %v1002_v5 = vmul.f32 0.03125, %v998_v4 }
 0x90a   :  { %v1004_v6 = vsub.f32 %v992_v61, %v1002_v5 }
 0x90b   :  { %v1001_v7 = vpop.xlane.xlu0 %1000 }
 0x90c   :  { %v1003_v8 = vmul.f32 0.03125, %v1001_v7  ;;  %v1006_v11 = vmul.f32 %v1004_v6, %v1004_v6 }
 0x90e   :  { %v1005_v12 = vsub.f32 %v993_v2, %v1003_v8  ;;  %v1008_v13 = vsel %vm152_vm1, %v1006_v11, 0.0 }
 0x90f   :  { %1009 = vadd.xlane.f32.xlu1 %v1008_v13 }
 0x910   :  { %v1007_v14 = vmul.f32 %v1005_v12, %v1005_v12 }
 0x912   :  { %v1011_v15 = vsel %vm152_vm1, %v1007_v14, 0.0 }
 0x913   :  { %1012 = vadd.xlane.f32.xlu0 %v1011_v15 }
 0x998   :  { %v1010_v18 = vpop.xlane.xlu1 %1009 }
 0x999   :  { %v1014_v20 = vmul.f32 0.03125, %v1010_v18 }
 0x99b   :  { %v1016_v9 = vadd.f32 1e-05, %v1014_v20 }
 0x99c   :  { %v1013_v21 = vpop.xlane.xlu0 %1012 }
 0x99d   :  { %2396 = vrsqrt.f32 %v1016_v9  ;;  %v1015_v22 = vmul.f32 0.03125, %v1013_v21 }
 0x99f   :  { %v1017_v10 = vadd.f32 1e-05, %v1015_v22 }
 0x9a1   :  { %2398 = vrsqrt.f32 %v1017_v10 }
 0x9aa   :  { %v2397_v23 = vpop.eup %2396 }
 0x9ab   :  { %v1020_v24 = vmul.f32 %v2397_v23, %v1004_v6 }
 0x9ad   :  { %v1028_v28 = vmul.f32 %v2002_v25, %v1020_v24 }
 0x9ae   :  { %v2399_v26 = vpop.eup %2398 }
 0x9af   :  { %v1021_v27 = vmul.f32 %v2399_v26, %v1005_v12  ;;  %v2837_v31 = vadd.f32 %v2003_v29, %v1028_v28 }
 0x9b1   :  { %v1029_v30 = vmul.f32 %v2002_v25, %v1021_v27 }
 0x9b3   :  { %v2839_v32 = vadd.f32 %v2003_v29, %v1029_v30 }
 0x9b5   :  { %v1038_v33 = vpack.c.bf16 %v2839_v32, %v2837_v31 }
 0x9b7   :  { %2211 = vmatmul.mubr.msk.bf16.vlgmr.msra.gmra.mxu0 %vm152_vm1, %v1038_v33 }
 0x9b8   :  { %2216 = vmatprep.mubr.msk.bf16.mxu0 %vm2511_vm0, %v2510_v0 }
 0xa77   :  { %v1101_v34 = vpop.f32.mrf.mxu0 }
 0xa78   :  { %v1102_v39 = vadd.f32 %v2009_v35, %v1101_v34 }
 0xa79   :  { %v2212_v36 = vpop.f32.mrf.mxu0 }
 0xa7b   :  { %v1104_v38 = vpop.f32.mrf.mxu0 }
 0xa7c   :  { %v1105_v40 = vadd.f32 %v2009_v35, %v1104_v38 }
 0xa7d   :  { %v2213_v41 = vpop.f32.mrf.mxu0 }
 0xa7e   :  { %v2849_v42 = vpack.c.bf16 %v1105_v40, %v1102_v39 }
 0xa80   :  { %1233 = vrot.lane.b32.xlu0 %v2849_v42, %s2515_s18  ;;  %1110 = vrot.lane.b32.xlu1 %v2849_v42, %s2513_s30  ;;  %s3053_s30 = smov 8  }
 0xa84   :  { %1354 = vrot.lane.b32.xlu0 %v2849_v42, %s2517_s20  ;;  %1231 = vrot.lane.b32.xlu1 %v2849_v42, %s2512_s29  ;;  %s3055_s20 = smov 24  }
 0xa88   :  { %1477 = vrot.lane.b32.xlu0 %v2849_v42, %s2518_s21  ;;  %1356 = vrot.lane.b32.xlu1 %v2849_v42, %s2514_s15 }
 0xa8c   :  { %1479 = vrot.lane.b32.xlu1 %v2849_v42, %s2516_s19  ;;  %s3054_s19 = smov 16  }
 0xaf2   :  { %v1111_v44 = vpop.permute.xlu1 %1110  ;;  %v1234_v46 = vpop.permute.xlu0 %1233 }
 0xaf3   :  { %v1116_v45 = vsel %vm201_vm2, %v1111_v44, 0  ;;  %v1239_v48 = vsel %vm201_vm2, %v1234_v46, 0 }
 0xaf4   :  { %2215 = vmatpush3.bf16.xpose.msra.mxu0 %v1116_v45 }
 0xaf5   :  { %2226 = vmatprep.subr.bf16.mxu0 %v2510_v0 }
 0xaf6   :  { %v1232_v47 = vpop.permute.xlu1 %1231  ;;  %v1355_v52 = vpop.permute.xlu0 %1354 }
 0xafa   :  { %v1357_v49 = vpop.permute.xlu1 %1356  ;;  %v1478_v54 = vpop.permute.xlu0 %1477 }
 0xafb   :  { %2217 = vmatmul.mubr.msk.bf16.vlgmr.msra.gmra.mxu0 %vm201_vm2, %v2849_v42  ;;  %v1362_v50 = vsel %vm201_vm2, %v1357_v49, 0 }
 0xafc   :  { %2227 = vmatpush3.bf16.xpose.msra.mxu0 %v1239_v48  ;;  %2228 = vmatprep.mubr.msk.bf16.mxu0 %vm2511_vm0, %v2510_v0 }
 0xafd   :  { %2238 = vmatprep.subr.bf16.mxu0 %v2510_v0 }
 0xafe   :  { %v1480_v51 = vpop.permute.xlu1 %1479 }
 0xaff   :  { %v1485_v53 = vsel %vm201_vm2, %v1480_v51, 0 }
 0xb03   :  { %2229 = vmatmul.mubr.msk.bf16.vlgmr.msra.gmra.mxu0 %vm201_vm2, %v1232_v47 }
 0xb04   :  { %2239 = vmatpush3.bf16.xpose.msra.mxu0 %v1362_v50  ;;  %2240 = vmatprep.mubr.msk.bf16.mxu0 %vm2511_vm0, %v2510_v0 }
 0xb05   :  { %2250 = vmatprep.subr.bf16.mxu0 %v2510_v0 }
 0xb0b   :  { %2241 = vmatmul.mubr.msk.bf16.vlgmr.msra.gmra.mxu0 %vm201_vm2, %v1355_v52 }
 0xb0c   :  { %2251 = vmatpush3.bf16.xpose.msra.mxu0 %v1485_v53  ;;  %2252 = vmatprep.mubr.msk.bf16.mxu0 %vm2511_vm0, %v2510_v0 }
 0xb0d   :  { %2262 = vmatprep.subr.bf16.mxu0 %v2510_v0 }
 0xb13   :  { %2253 = vmatmul.mubr.msk.bf16.vlgmr.msra.gmra.mxu0 %vm201_vm2, %v1478_v54 }
 0xb14   :  { %2266 = vmatprep.mubr.msk.bf16.mxu0 %vm2511_vm0, %v2510_v0 }
 0xbbb   :  { %v1152_v55 = vpop.f32.mrf.mxu0 }
 0xbbc   :  { %v1159_v56 = vsel %vm2676_vm3, %v1152_v55, -1e+30 }
 0xbbd   :  { %v2218_v57 = vpop.f32.mrf.mxu0  ;;  %v1161_v58 = vsel %vm251_vm4, %v1159_v56, -inf }
 0xbbe   :  { %1162 = vmax.xlane.f32.xlu1 %v1161_v58 }
 0xbbf   :  { %v1155_v59 = vpop.f32.mrf.mxu0 }
 0xbc0   :  { %v1160_v60 = vsel %vm2683_vm5, %v1155_v59, -1e+30 }
 0xbc1   :  { %v2219_v61 = vpop.f32.mrf.mxu0  ;;  %v1164_v62 = vsel %vm251_vm4, %v1160_v60, -inf }
 0xbc2   :  { %1165 = vmax.xlane.f32.xlu0 %v1164_v62 }
 0xbc3   :  { %v1275_v63 = vpop.f32.mrf.mxu0 }
 0xbc4   :  { %v1282_v19 = vsel %vm2676_vm3, %v1275_v63, -1e+30 }
 0xbc5   :  { %v2230_v1 = vpop.f32.mrf.mxu0  ;;  %v1284_v2 = vsel %vm251_vm4, %v1282_v19, -inf }
 0xbc6   :  { %1285 = vmax.xlane.f32.xlu0 %v1284_v2 }
 0xbc7   :  { %v1278_v3 = vpop.f32.mrf.mxu0 }
 0xbc8   :  { %v1283_v4 = vsel %vm2683_vm5, %v1278_v3, -1e+30 }
 0xbc9   :  { %v2231_v5 = vpop.f32.mrf.mxu0  ;;  %v1287_v6 = vsel %vm251_vm4, %v1283_v4, -inf }
 0xbca   :  { %1288 = vmax.xlane.f32.xlu1 %v1287_v6 }
 0xbcb   :  { %v1398_v7 = vpop.f32.mrf.mxu0 }
 0xbcc   :  { %v1405_v8 = vsel %vm2676_vm3, %v1398_v7, -1e+30 }
 0xbcd   :  { %v2242_v11 = vpop.f32.mrf.mxu0  ;;  %v1407_v12 = vsel %vm251_vm4, %v1405_v8, -inf }
 0xbce   :  { %1408 = vmax.xlane.f32.xlu0 %v1407_v12 }
 0xbcf   :  { %v1401_v13 = vpop.f32.mrf.mxu0 }
 0xbd0   :  { %v1406_v14 = vsel %vm2683_vm5, %v1401_v13, -1e+30 }
 0xbd1   :  { %v2243_v15 = vpop.f32.mrf.mxu0  ;;  %v1410_v16 = vsel %vm251_vm4, %v1406_v14, -inf }
 0xbd2   :  { %1411 = vmax.xlane.f32.xlu1 %v1410_v16 }
 0xbd3   :  { %v1521_v17 = vpop.f32.mrf.mxu0 }
 0xbd4   :  { %v1528_v18 = vsel %vm2676_vm3, %v1521_v17, -1e+30 }
 0xbd5   :  { %v2254_v20 = vpop.f32.mrf.mxu0  ;;  %v1530_v9 = vsel %vm251_vm4, %v1528_v18, -inf }
 0xbd6   :  { %1531 = vmax.xlane.f32.xlu0 %v1530_v9 }
 0xbd7   :  { %v1524_v21 = vpop.f32.mrf.mxu0 }
 0xbd8   :  { %v1529_v22 = vsel %vm2683_vm5, %v1524_v21, -1e+30 }
 0xbd9   :  { %v2255_v10 = vpop.f32.mrf.mxu0  ;;  %v1533_v23 = vsel %vm251_vm4, %v1529_v22, -inf }
 0xbda   :  { %1534 = vmax.xlane.f32.xlu1 %v1533_v23 }
 0xc47   :  { %v1163_v24 = vpop.xlane.xlu1 %1162 }
 0xc48   :  { %v1167_v25 = vsub.f32 %v1159_v56, %v1163_v24 }
 0xc4a   :  { %v1169_v26 = vmul.f32 1.442695, %v1167_v25 }
 0xc4b   :  { %v1166_v27 = vpop.xlane.xlu0 %1165 }
 0xc4c   :  { %2400 = vpow2.f32 %v1169_v26  ;;  %v1168_v28 = vsub.f32 %v1160_v60, %v1166_v27 }
 0xc4e   :  { %v1171_v37 = vmul.f32 1.442695, %v1168_v28 }
 0xc4f   :  { %v1286_v29 = vpop.xlane.xlu0 %1285 }
 0xc50   :  { %2402 = vpow2.f32 %v1171_v37  ;;  %v1290_v30 = vsub.f32 %v1282_v19, %v1286_v29 }
 0xc52   :  { %v1292_v33 = vmul.f32 1.442695, %v1290_v30 }
 0xc53   :  { %v1289_v40 = vpop.xlane.xlu1 %1288 }
 0xc54   :  { %2404 = vpow2.f32 %v1292_v33  ;;  %v1291_v41 = vsub.f32 %v1283_v4, %v1289_v40 }
 0xc56   :  { %v1294_v47 = vmul.f32 1.442695, %v1291_v41 }
 0xc57   :  { %v1409_v44 = vpop.xlane.xlu0 %1408 }
 0xc58   :  { %v1413_v46 = vsub.f32 %v1405_v8, %v1409_v44  ;;  %2406 = vpow2.f32 %v1294_v47 }
 0xc59   :  { %v2401_v34 = vpop.eup %2400 }
 0xc5a   :  { %v1173_v43 = vsel %vm251_vm4, %v2401_v34, 0.0  ;;  %v1415_v51 = vmul.f32 1.442695, %v1413_v46 }
 0xc5b   :  { %1174 = vadd.xlane.f32.xlu0 %v1173_v43  ;;  %v1412_v45 = vpop.xlane.xlu1 %1411 }
 0xc5c   :  { %v1414_v48 = vsub.f32 %v1406_v14, %v1412_v45  ;;  %2408 = vpow2.f32 %v1415_v51  ;;  %v2352_v45 = vld [vmem:[%s3033_s4 + $0x18] sm:$0xff]  }
 0xc5d   :  { %v2403_v35 = vpop.eup %2402  ;;  %2263 = vmatpush3.bf16.msra.mxu0 %v2352_v45 }
 0xc5e   :  { %v1176_v36 = vsel %vm251_vm4, %v2403_v35, 0.0  ;;  %v1417_v53 = vmul.f32 1.442695, %v1414_v48  ;;  %2264 = vmatprep.subr.bf16.mxu0 %v2510_v0 }
 0xc5f   :  { %1177 = vadd.xlane.f32.xlu1 %v1176_v36  ;;  %v1532_v49 = vpop.xlane.xlu0 %1531 }
 0xc60   :  { %v1536_v52 = vsub.f32 %v1528_v18, %v1532_v49  ;;  %2410 = vpow2.f32 %v1417_v53 }
 0xc61   :  { %v2912_v38 = vpop.eup %2404 }
 0xc62   :  { %v1296_v39 = vsel %vm251_vm4, %v2912_v38, 0.0  ;;  %v1538_v55 = vmul.f32 1.442695, %v1536_v52 }
 0xc63   :  { %1297 = vadd.xlane.f32.xlu0 %v1296_v39  ;;  %v1535_v50 = vpop.xlane.xlu1 %1534 }
 0xc64   :  { %v1537_v54 = vsub.f32 %v1529_v22, %v1535_v50  ;;  %2412 = vpow2.f32 %v1538_v55  ;;  %v2353_v50 = vld [vmem:[%s3033_s4 + $0x10] sm:$0xff]  }
 0xc65   :  { %v2407_v57 = vpop.eup %2406  ;;  %2265 = vmatpush3.bf16.msra.mxu0 %v2353_v50 }
 0xc66   :  { %v1540_v56 = vmul.f32 1.442695, %v1537_v54  ;;  %v1299_v59 = vsel %vm251_vm4, %v2407_v57, 0.0  ;;  %2278 = vmatprep.subr.bf16.mxu0 %v2510_v0 }
 0xc68   :  { %2414 = vpow2.f32 %v1540_v56 }
 0xc69   :  { %v2409_v58 = vpop.eup %2408 }
 0xc6a   :  { %v1419_v62 = vsel %vm251_vm4, %v2409_v58, 0.0 }
 0xc6d   :  { %v2411_v60 = vpop.eup %2410 }
 0xc6e   :  { %v1422_v63 = vsel %vm251_vm4, %v2411_v60, 0.0 }
 0xc70   :  { %1307 = vrot.lane.b32.xlu1 %v2849_v42, %s2519_s22 }
 0xc71   :  { %v2413_v61 = vpop.eup %2412 }
 0xc72   :  { %v1542_v1 = vsel %vm251_vm4, %v2413_v61, 0.0 }
 0xc75   :  { %v2415_v19 = vpop.eup %2414 }
 0xc76   :  { %v1545_v2 = vsel %vm251_vm4, %v2415_v19, 0.0 }
 0xc79   :  { %1184 = vrot.lane.b32.xlu0 %v2849_v42, %s2520_s23 }
 0xc94   :  { %1300 = vadd.xlane.f32.xlu1 %v1299_v59 }
 0xc98   :  { %1420 = vadd.xlane.f32.xlu0 %v1419_v62  ;;  %1423 = vadd.xlane.f32.xlu1 %v1422_v63 }
 0xc9c   :  { %1543 = vadd.xlane.f32.xlu0 %v1542_v1  ;;  %1546 = vadd.xlane.f32.xlu1 %v1545_v2 }
 0xcad   :  { %1430 = vrot.lane.b32.xlu1 %v2849_v42, %s2521_s24 }
 0xcb2   :  { %1553 = vrot.lane.b32.xlu0 %v2849_v42, %s2522_s0 }
 0xce4   :  { %v1175_v3 = vpop.xlane.xlu0 %1174 }
 0xce5   :  { %2416 = vrcp.f32 %v1175_v3 }
 0xce8   :  { %v1178_v4 = vpop.xlane.xlu1 %1177 }
 0xce9   :  { %2418 = vrcp.f32 %v1178_v4 }
 0xcec   :  { %v1298_v5 = vpop.xlane.xlu0 %1297  ;;  %v1308_v14 = vpop.permute.xlu1 %1307 }
 0xced   :  { %2420 = vrcp.f32 %v1298_v5 }
 0xcf0   :  { %v1185_v6 = vpop.permute.xlu0 %1184 }
 0xcf1   :  { %2221 = vmatpush3.bf16.msra.mxu1 %v1185_v6 }
 0xcf2   :  { %2232 = vmatprep.subr.bf16.mxu1 %v2510_v0  ;;  %v2417_v7 = vpop.eup %2416 }
 0xcf3   :  { %v1181_v11 = vmul.f32 %v2417_v7, %v2401_v34 }
 0xcf6   :  { %v2419_v8 = vpop.eup %2418 }
 0xcf7   :  { %v1182_v12 = vmul.f32 %v2419_v8, %v2403_v35 }
 0xcf9   :  { %v1183_v13 = vpack.c.bf16 %v1182_v12, %v1181_v11 }
 0xcfa   :  { %v2421_v20 = vpop.eup %2420 }
 0xcfb   :  { %2223 = vmatmul.mubr.msk.bf16.vlgmr.msra.gmra.mxu1 %vm251_vm4, %v1183_v13  ;;  %v1304_v21 = vmul.f32 %v2421_v20, %v2912_v38  ;;  %v2026_v13 = vld [vmem:[%s3034_s5 + $0x1] ss:$0 sm:$0xff] }
 0xcfc   :  { %2233 = vmatpush3.bf16.msra.mxu1 %v1308_v14  ;;  %2234 = vmatprep.mubr.msk.bf16.mxu1 %vm2511_vm0, %v2510_v0 }
 0xcfd   :  { %2244 = vmatprep.subr.bf16.mxu1 %v2510_v0 }
 0xd1d   :  { %v1301_v42 = vpop.xlane.xlu1 %1300 }
 0xd1e   :  { %2422 = vrcp.f32 %v1301_v42 }
 0xd21   :  { %v1421_v15 = vpop.xlane.xlu0 %1420  ;;  %v1424_v16 = vpop.xlane.xlu1 %1423 }
 0xd22   :  { %2424 = vrcp.f32 %v1421_v15 }
 0xd23   :  { %2426 = vrcp.f32 %v1424_v16 }
 0xd25   :  { %v1544_v17 = vpop.xlane.xlu0 %1543  ;;  %v1547_v18 = vpop.xlane.xlu1 %1546 }
 0xd26   :  { %2428 = vrcp.f32 %v1544_v17 }
 0xd27   :  { %2430 = vrcp.f32 %v1547_v18 }
 0xd29   :  { %v1431_v25 = vpop.permute.xlu1 %1430  ;;  %v1554_v30 = vpop.permute.xlu0 %1553 }
 0xd2b   :  { %v2423_v9 = vpop.eup %2422 }
 0xd2c   :  { %v1305_v22 = vmul.f32 %v2423_v9, %v2407_v57 }
 0xd2e   :  { %v1306_v10 = vpack.c.bf16 %v1305_v22, %v1304_v21 }
 0xd2f   :  { %v2425_v23 = vpop.eup %2424 }
 0xd30   :  { %v2427_v24 = vpop.eup %2426  ;;  %2235 = vmatmul.mubr.msk.bf16.vlgmr.msra.gmra.mxu1 %vm251_vm4, %v1306_v10  ;;  %v1427_v26 = vmul.f32 %v2425_v23, %v2409_v58 }
 0xd31   :  { %2245 = vmatpush3.bf16.msra.mxu1 %v1431_v25  ;;  %2246 = vmatprep.mubr.msk.bf16.mxu1 %vm2511_vm0, %v2510_v0  ;;  %v1428_v27 = vmul.f32 %v2427_v24, %v2411_v60 }
 0xd32   :  { %2256 = vmatprep.subr.bf16.mxu1 %v2510_v0 }
 0xd33   :  { %v2429_v28 = vpop.eup %2428  ;;  %v1429_v37 = vpack.c.bf16 %v1428_v27, %v1427_v26 }
 0xd34   :  { %v2431_v29 = vpop.eup %2430  ;;  %v1550_v33 = vmul.f32 %v2429_v28, %v2413_v61 }
 0xd35   :  { %v1551_v34 = vmul.f32 %v2431_v29, %v2415_v19 }
 0xd37   :  { %v1552_v43 = vpack.c.bf16 %v1551_v34, %v1550_v33  ;;  %v2356_v33 = vld [vmem:[%s3037_s8 + $0x38] sm:$0xff]  }
 0xd38   :  { %2247 = vmatmul.mubr.msk.bf16.vlgmr.msra.gmra.mxu1 %vm251_vm4, %v1429_v37 }
 0xd39   :  { %2257 = vmatpush3.bf16.msra.mxu1 %v1554_v30  ;;  %2258 = vmatprep.mubr.msk.bf16.mxu1 %vm2511_vm0, %v2510_v0  ;;  %v2355_v30 = vld [vmem:[%s3035_s6 + $0x10] sm:$0xff]  }
 0xd3a   :  { %2270 = vmatprep.subr.bf16.mxu1 %v2510_v0 }
 0xd40   :  { %2259 = vmatmul.mubr.msk.bf16.vlgmr.msra.gmra.mxu1 %vm251_vm4, %v1552_v43 }
 0xd41   :  { %2274 = vmatprep.mubr.msk.bf16.mxu1 %vm2511_vm0, %v2510_v0 }
 0xdbb   :  { %v1224_v35 = vpop.f32.mrf.mxu1 }
 0xdbd   :  { %v2224_v36 = vpop.f32.mrf.mxu1 }
 0xdbf   :  { %v1227_v38 = vpop.f32.mrf.mxu1 }
 0xdc1   :  { %v2225_v39 = vpop.f32.mrf.mxu1 }
 0xdf0   :  { %v1347_v40 = vpop.f32.mrf.mxu1 }
 0xdf2   :  { %v2236_v41 = vpop.f32.mrf.mxu1 }
 0xdf4   :  { %v1350_v44 = vpop.f32.mrf.mxu1 }
 0xdf5   :  { %v2325_v46 = vpack.i.bf16 %v1350_v44, %v1347_v40  ;;  %v2032_v44 = vld [vmem:[%s3039_s10 + $0x1] ss:$0 sm:$0xff] }
 0xdf6   :  { %v2237_v47 = vpop.f32.mrf.mxu1 }
 0xdf7   :  { %2326 = vrot.lane.b32.xlu1 %v2325_v46, %s3053_s30 }
 0xdf8   :  { %v1470_v48 = vpop.f32.mrf.mxu1 }
 0xdfa   :  { %v2248_v49 = vpop.f32.mrf.mxu1 }
 0xdfc   :  { %v1473_v51 = vpop.f32.mrf.mxu1 }
 0xdfd   :  { %v2330_v52 = vpack.i.bf16 %v1473_v51, %v1470_v48  ;;  %v2033_v48 = vld [vmem:[%s3040_s11 + $0x1] ss:$0 sm:$0xff] }
 0xdfe   :  { %v2249_v53 = vpop.f32.mrf.mxu1 }
 0xdff   :  { %2331 = vrot.lane.b32.xlu0 %v2330_v52, %s3054_s19  ;;  %v2357_v53 = vld [vmem:[%s3037_s8 + $0x30] sm:$0xff]  }
 0xe00   :  { %v1593_v54 = vpop.f32.mrf.mxu1 }
 0xe02   :  { %v2260_v55 = vpop.f32.mrf.mxu1 }
 0xe03   :  { %v2359_v55 = vld [vmem:[%s3037_s8 + $0x20] sm:$0xff]  }
 0xe04   :  { %v1596_v56 = vpop.f32.mrf.mxu1 }
 0xe05   :  { %v2335_v57 = vpack.i.bf16 %v1596_v56, %v1593_v54  ;;  %v2358_v54 = vld [vmem:[%s3037_s8 + $0x28] sm:$0xff]   ;;  %v2039_v56 = vld [vmem:[%s3036_s7 + $0x1] ss:$0 sm:$0xff] }
 0xe06   :  { %v2261_v58 = vpop.f32.mrf.mxu1 }
 0xe07   :  { %2336 = vrot.lane.b32.xlu1 %v2335_v57, %s3055_s20  ;;  %s2525_s20 = smov [#allocation7]  }
 0xe08   :  { %s1961_s4 = sshll.u32 %s2525_s20, 4  ;;  %s1962_s4 = int_to_ptr.vmem [resolvable:$true] %s1961_s4 }
 0xe09   :  { %s2480_s21 = scalar_lea.vmem %s1962_s4, 256  ;;  %p2485_p11 = scmp.lt.s32.totalorder %s1962_s4, %s1962_s4 }
 0xe0a   :  { %p2481_p10 = scmp.ne.s32.totalorder %s1962_s4, %s2480_s21  ;;  %p2486_p12 = scmp.lt.s32.totalorder %s2480_s21, %s2480_s21 }
 0xe0c   :  { %p2487_p13 = por %p2486_p12, %p2485_p11 }
 0xe0e   :  { %p2488_p0 = pnand %p2487_p13, %p2481_p10 }
 0xe69   :  { %v2327_v59 = vpop.permute.xlu1 %2326 }
 0xe6a   :  { %v2329_v61 = vunpack.i.h.bf16 %v2327_v59  ;;  %v2328_v62 = vunpack.i.l.bf16 %v2327_v59 }
 0xe6c   :  { %v1625_v2 = vsel %vm201_vm2, %v1227_v38, %v2329_v61  ;;  %v1624_v3 = vsel %vm201_vm2, %v1224_v35, %v2328_v62 }
 0xe71   :  { %v2332_v60 = vpop.permute.xlu0 %2331 }
 0xe72   :  { %v2334_v63 = vunpack.i.h.bf16 %v2332_v60  ;;  %v2333_v19 = vunpack.i.l.bf16 %v2332_v60 }
 0xe74   :  { %v1627_v6 = vsel %vm251_vm4, %v1625_v2, %v2334_v63  ;;  %v1626_v7 = vsel %vm251_vm4, %v1624_v3, %v2333_v19 }
 0xe79   :  { %v2337_v1 = vpop.permute.xlu1 %2336 }
 0xe7a   :  { %v2339_v4 = vunpack.i.h.bf16 %v2337_v1  ;;  %v2338_v5 = vunpack.i.l.bf16 %v2337_v1 }
 0xe7c   :  { %v1629_v8 = vsel %vm719_vm6, %v1627_v6, %v2339_v4  ;;  %v1628_v11 = vsel %vm719_vm6, %v1626_v7, %v2338_v5 }
 0xe7d   :  { %v1630_v12 = vpack.c.bf16 %v1629_v8, %v1628_v11 }
 0xe7f   :  { %2267 = vmatmul.mubr.msk.bf16.vlgmr.msra.gmra.mxu0 %vm152_vm1, %v1630_v12 }
 0xe80   :  { %2286 = vmatprep.mubr.msk.bf16.mxu0 %vm2511_vm0, %v2510_v0  ;;  %2279 = vmatpush3.bf16.msra.mxu0 %v2356_v33 }
 0xe81   :  { %2280 = vmatprep.subr.bf16.mxu0 %v2510_v0 }
 0xe84   :  { %2281 = vmatpush3.bf16.msra.mxu0 %v2357_v53 }
 0xe85   :  { %2282 = vmatprep.subr.bf16.mxu0 %v2510_v0 }
 0xe88   :  { %2283 = vmatpush3.bf16.msra.mxu0 %v2358_v54 }
 0xe89   :  { %2284 = vmatprep.subr.bf16.mxu0 %v2510_v0 }
 0xe8c   :  { %2285 = vmatpush3.bf16.msra.mxu0 %v2359_v55 }
 0xf3f   :  { %v1693_v14 = vpop.f32.mrf.mxu0 }
 0xf40   :  { %v1694_v42 = vadd.f32 %v2026_v13, %v1693_v14 }
 0xf41   :  { %v2268_v15 = vpop.f32.mrf.mxu0 }
 0xf42   :  { %v1700_v16 = vadd.f32 %v1694_v42, %v2837_v31 }
 0xf43   :  { %v1696_v17 = vpop.f32.mrf.mxu0 }
 0xf44   :  { %v1697_v18 = vadd.f32 %v2026_v13, %v1696_v17  ;;  %v1706_v20 = vsel %vm152_vm1, %v1700_v16, 0.0 }
 0xf45   :  { %1707 = vadd.xlane.f32.xlu0 %v1706_v20  ;;  %v2269_v9 = vpop.f32.mrf.mxu0 }
 0xf46   :  { %v1701_v21 = vadd.f32 %v1697_v18, %v2839_v32  ;;  %v2354_v32 = vld [vmem:[%s3035_s6 + $0x18] sm:$0xff]  }
 0xf47   :  { %2271 = vmatpush3.bf16.msra.mxu1 %v2354_v32 }
 0xf48   :  { %v1709_v22 = vsel %vm152_vm1, %v1701_v21, 0.0  ;;  %2272 = vmatprep.subr.bf16.mxu1 %v2510_v0  ;;  %v2052_v0 = vld [vmem:[%s3038_s9 + $0x1] ss:$0 sm:$0xff] }
 0xf49   :  { %1710 = vadd.xlane.f32.xlu1 %v1709_v22 }
 0xf4b   :  { %2273 = vmatpush3.bf16.msra.mxu1 %v2355_v30 }
 0xfce   :  { %v1708_v10 = vpop.xlane.xlu0 %1707 }
 0xfcf   :  { %v1712_v23 = vmul.f32 0.03125, %v1708_v10 }
 0xfd1   :  { %v1714_v24 = vsub.f32 %v1700_v16, %v1712_v23 }
 0xfd2   :  { %v1711_v25 = vpop.xlane.xlu1 %1710 }
 0xfd3   :  { %v1713_v26 = vmul.f32 0.03125, %v1711_v25  ;;  %v1716_v27 = vmul.f32 %v1714_v24, %v1714_v24 }
 0xfd5   :  { %v1715_v28 = vsub.f32 %v1701_v21, %v1713_v26  ;;  %v1718_v31 = vsel %vm152_vm1, %v1716_v27, 0.0 }
 0xfd6   :  { %1719 = vadd.xlane.f32.xlu0 %v1718_v31  ;;  %v2060_v31 = vld [vmem:[%s3041_s12 + $0x1] ss:$0 sm:$0xff] }
 0xfd7   :  { %v1717_v37 = vmul.f32 %v1715_v28, %v1715_v28 }
 0xfd9   :  { %v1721_v29 = vsel %vm152_vm1, %v1717_v37, 0.0 }
 0xfda   :  { %1722 = vadd.xlane.f32.xlu0 %v1721_v29  ;;  %v2061_v29 = vld [vmem:[%s3042_s13 + $0x1] ss:$0 sm:$0xff] }
0x105f   :  { %v1720_v34 = vpop.xlane.xlu0 %1719 }
0x1060   :  { %v1724_v43 = vmul.f32 0.03125, %v1720_v34 }
0x1062   :  { %v1726_v35 = vadd.f32 1e-05, %v1724_v43 }
0x1063   :  { %v1723_v36 = vpop.xlane.xlu0 %1722 }
0x1064   :  { %2432 = vrsqrt.f32 %v1726_v35  ;;  %v1725_v38 = vmul.f32 0.03125, %v1723_v36 }
0x1066   :  { %v1727_v39 = vadd.f32 1e-05, %v1725_v38 }
0x1068   :  { %2434 = vrsqrt.f32 %v1727_v39 }
0x1071   :  { %v2433_v40 = vpop.eup %2432 }
0x1072   :  { %v1730_v41 = vmul.f32 %v2433_v40, %v1714_v24 }
0x1074   :  { %v1738_v47 = vmul.f32 %v2032_v44, %v1730_v41 }
0x1075   :  { %v2435_v45 = vpop.eup %2434 }
0x1076   :  { %v1731_v46 = vmul.f32 %v2435_v45, %v1715_v28  ;;  %v1746_v50 = vadd.f32 %v2033_v48, %v1738_v47 }
0x1078   :  { %v1739_v49 = vmul.f32 %v2032_v44, %v1731_v46 }
0x107a   :  { %v1747_v51 = vadd.f32 %v2033_v48, %v1739_v49 }
0x107c   :  { %v1748_v52 = vpack.c.bf16 %v1747_v51, %v1746_v50 }
0x107e   :  { %2275 = vmatmul.mubr.msk.bf16.vlgmr.msra.gmra.mxu1 %vm152_vm1, %v1748_v52 }
0x113e   :  { %v1811_v57 = vpop.f32.mrf.mxu1 }
0x113f   :  { %v1812_v59 = vadd.f32 %v2039_v56, %v1811_v57 }
0x1140   :  { %v2276_v58 = vpop.f32.mrf.mxu1 }
0x1141   :  { %v1818_v63 = vmax.f32 %v1812_v59, 0.0 }
0x1142   :  { %v1814_v60 = vpop.f32.mrf.mxu1 }
0x1143   :  { %v1815_v61 = vadd.f32 %v2039_v56, %v1814_v60 }
0x1144   :  { %v2277_v62 = vpop.f32.mrf.mxu1 }
0x1145   :  { %v1819_v19 = vmax.f32 %v1815_v61, 0.0 }
0x1147   :  { %v1820_v1 = vpack.c.bf16 %v1819_v19, %v1818_v63 }
0x1149   :  { %2287 = vmatmul.mubr.msk.bf16.vlgmr.msra.gmra.mxu0 %vm947_vm7, %v1820_v1 }
0x1209   :  { %v1899_v2 = vpop.f32.mrf.mxu0 }
0x120a   :  { %v1900_v3 = vadd.f32 %v2052_v0, %v1899_v2 }
0x120b   :  { %v2288_v4 = vpop.f32.mrf.mxu0 }
0x120c   :  { %v1906_v5 = vadd.f32 %v1900_v3, %v1746_v50 }
0x120d   :  { %v1902_v6 = vpop.f32.mrf.mxu0 }
0x120e   :  { %v1903_v7 = vadd.f32 %v2052_v0, %v1902_v6  ;;  %v1912_v8 = vsel %vm152_vm1, %v1906_v5, 0.0 }
0x120f   :  { %1913 = vadd.xlane.f32.xlu1 %v1912_v8  ;;  %v2289_v11 = vpop.f32.mrf.mxu0 }
0x1210   :  { %v1907_v12 = vadd.f32 %v1903_v7, %v1747_v51 }
0x1212   :  { %v1915_v13 = vsel %vm152_vm1, %v1907_v12, 0.0 }
0x1213   :  { %1916 = vadd.xlane.f32.xlu0 %v1915_v13 }
0x1298   :  { %v1914_v14 = vpop.xlane.xlu1 %1913 }
0x1299   :  { %v1918_v42 = vmul.f32 0.03125, %v1914_v14 }
0x129b   :  { %v1920_v15 = vsub.f32 %v1906_v5, %v1918_v42 }
0x129c   :  { %v1917_v16 = vpop.xlane.xlu0 %1916 }
0x129d   :  { %v1919_v17 = vmul.f32 0.03125, %v1917_v16  ;;  %v1922_v18 = vmul.f32 %v1920_v15, %v1920_v15 }
0x129f   :  { %v1921_v20 = vsub.f32 %v1907_v12, %v1919_v17  ;;  %v1924_v9 = vsel %vm152_vm1, %v1922_v18, 0.0 }
0x12a0   :  { %1925 = vadd.xlane.f32.xlu1 %v1924_v9 }
0x12a1   :  { %v1923_v21 = vmul.f32 %v1921_v20, %v1921_v20 }
0x12a3   :  { %v1927_v22 = vsel %vm152_vm1, %v1923_v21, 0.0 }
0x12a4   :  { %1928 = vadd.xlane.f32.xlu0 %v1927_v22 }
0x1329   :  { %v1926_v10 = vpop.xlane.xlu1 %1925 }
0x132a   :  { %v1930_v23 = vmul.f32 0.03125, %v1926_v10 }
0x132c   :  { %v1932_v24 = vadd.f32 1e-05, %v1930_v23 }
0x132d   :  { %v1929_v25 = vpop.xlane.xlu0 %1928 }
0x132e   :  { %2436 = vrsqrt.f32 %v1932_v24  ;;  %v1931_v26 = vmul.f32 0.03125, %v1929_v25 }
0x1330   :  { %v1933_v27 = vadd.f32 1e-05, %v1931_v26 }
0x1332   :  { %2438 = vrsqrt.f32 %v1933_v27 }
0x133b   :  { %v2437_v28 = vpop.eup %2436 }
0x133c   :  { %v1936_v37 = vmul.f32 %v2437_v28, %v1920_v15 }
0x133e   :  { %v1944_v32 = vmul.f32 %v2060_v31, %v1936_v37 }
0x133f   :  { %v2439_v30 = vpop.eup %2438 }
0x1340   :  { %v1937_v33 = vmul.f32 %v2439_v30, %v1921_v20  ;;  %v1952_v34 = vadd.f32 %v2061_v29, %v1944_v32 }
0x1342   :  { %v1945_v43 = vmul.f32 %v2060_v31, %v1937_v33  ;;  %1954 = vst.msk [vmem:[#allocation7] sm:$0xff] %vm152_vm1, %v1952_v34 }
0x1344   :  { %v1953_v35 = vadd.f32 %v2061_v29, %v1945_v43 }
0x1346   :  { %1955 = vst.msk [vmem:[#allocation7 + $0x8] sm:$0xff] %vm152_vm1, %v1953_v35 }
0x1347   :  { %2491 = shalt.err (!%p2488_p0)
}
0x1348   :  { %s3056_s12 = smov 128  }
0x1349   :  { %1967 = dma.vmem_to_hbm [thread:$0]  %s1962_s4, 256, %s3043_s14, [#allocation4], %s3056_s12, %s3056_s12, %s3053_s30  }
0x134a   :  { %2504 = dma.done.wait [#allocation4], 256  }
0x134b   :  { %2505 = vsyncadd [#allocation4], 4294967040 }
0x134c   :  { %1971 = vsyncpa [#allocation3], 1 }
0x134d   :  { %1972 = vsyncpa [#allocation6], 1 }
0x134e   :  { %1973 = vsyncpa [#allocation4], 1 }

</bundles_post_ra>
